<compile_context>
chip_gen: v7x
topology: tpu7x:2x2x1
jax: 0.10.0
libtpu: 0.0.40
codegen_flags: <defaults>
</compile_context>

<pallas_src>
import numpy as np
import jax
import jax.numpy as jnp
from jax.experimental import pallas as pl
from jax.experimental.pallas import tpu as pltpu

# ---- small config (scaled down from the original 196 / 2048 / 4096 / 8x64) ----
BATCH = 2
GRID_W = 4                     # orig: 14
SEQ = GRID_W * GRID_W          # 16 positions (orig: 196 = 14*14)
D_MODEL = 128                  # orig: 2048
D_FF = 256                     # orig: 4096
N_HEADS = 4                    # orig: 8
QKV_DIM = 64                   # orig: 64 (kept exactly)
HDK = N_HEADS * QKV_DIM        # 256
N_LAYERS = 2
EPS = 1e-5                     # nn.LayerNorm default
BF16 = jnp.bfloat16


# ---------------------------------------------------------------------------
# position embedding table (same formula as Encoder.get_position_embedding_table,
# with 14 -> GRID_W and 1024 -> D_MODEL // 2)
# ---------------------------------------------------------------------------
def get_position_embedding_table():
    half = D_MODEL // 2
    pos = np.arange(SEQ)
    x = pos % GRID_W
    y = pos // GRID_W
    hid = np.arange(half)
    x_enc = x[:, None] / np.power(10000.0, hid[None, :] / half)
    y_enc = y[:, None] / np.power(10000.0, hid[None, :] / half)
    even = (hid[None, :] % 2) == 0
    x_part = np.where(even, np.sin(x_enc), np.cos(x_enc))
    y_part = np.where(even, np.cos(y_enc), np.sin(y_enc))
    return jnp.asarray(np.concatenate([x_part, y_part], axis=1), dtype=jnp.float32)


# ---------------------------------------------------------------------------
# fused encoder kernel: all layers, MHA + FFN, grid over layer index
# ---------------------------------------------------------------------------
def encoder_kernel(x_ref, pos_ref,
                   wqkv_ref, bqkv_ref, wo_ref, bo_ref,
                   w1_ref, b1_ref, w2_ref, b2_ref,
                   out_ref, attn_ref,
                   x_scr, ctx_scr):
    layer = pl.program_id(0)

    # fold position-embedding add into the first layer's step (pos broadcast per batch)
    @pl.when(layer == 0)
    def _():
        for b in range(BATCH):
            r0 = b * SEQ
            x_scr[r0:r0 + SEQ, :] = x_ref[r0:r0 + SEQ, :] + pos_ref[...]

    x = x_scr[...]                                  # [B*L, D] f32, VMEM-resident
    xb = x.astype(BF16)

    # ---- Multi_Head_Attention ------------------------------------------------
    # fused QKV projection: one MXU stream over all batch rows and heads
    qkv = jnp.dot(xb, wqkv_ref[0], preferred_element_type=jnp.float32) + bqkv_ref[0]

    scale = 1.0 / float(np.sqrt(QKV_DIM))
    for b in range(BATCH):                          # static unroll (B, H small)
        r0 = b * SEQ
        for h in range(N_HEADS):
            c0 = h * QKV_DIM
            q_h = qkv[r0:r0 + SEQ, c0:c0 + QKV_DIM]
            k_h = qkv[r0:r0 + SEQ, HDK + c0:HDK + c0 + QKV_DIM]
            v_h = qkv[r0:r0 + SEQ, 2 * HDK + c0:2 * HDK + c0 + QKV_DIM]
            # Q @ K^T without an explicit transpose (contract last dims)
            s = jnp.einsum("qd,kd->qk", q_h.astype(BF16), k_h.astype(BF16),
                           preferred_element_type=jnp.float32) * scale
            # enc_self_attn_mask is all-False in Encoder.forward -> masked_fill is a no-op
            s = s - jnp.max(s, axis=-1, keepdims=True)
            e = jnp.exp(s)
            a = e * pl.reciprocal(jnp.sum(e, axis=-1, keepdims=True), approx=True)
            # lane-dense attention output: column block (b*H + h), width SEQ
            a0 = (b * N_HEADS + h) * SEQ
            attn_ref[0, :, a0:a0 + SEQ] = a
            # write context head directly into preallocated bf16 VMEM scratch
            ctx_scr[r0:r0 + SEQ, c0:c0 + QKV_DIM] = jnp.dot(
                a.astype(BF16), v_h.astype(BF16),
                preferred_element_type=jnp.float32).astype(BF16)

    # output projection + residual + LayerNorm (gamma=1, beta=0)
    o = jnp.dot(ctx_scr[...], wo_ref[0],
                preferred_element_type=jnp.float32) + bo_ref[0]
    # TODO(synk): dropout treated as identity (inference semantics)
    y = o + x
    m = jnp.mean(y, axis=-1, keepdims=True)
    c = y - m
    var = jnp.mean(c * c, axis=-1, keepdims=True)
    x1 = c * jax.lax.rsqrt(var + EPS)

    # ---- PoswiseFeedForwardNet (1x1 convs == per-position matmuls) ------------
    h1 = jnp.maximum(
        jnp.dot(x1.astype(BF16), w1_ref[0],
                preferred_element_type=jnp.float32) + b1_ref[0], 0.0)
    y2 = jnp.dot(h1.astype(BF16), w2_ref[0],
                 preferred_element_type=jnp.float32) + b2_ref[0] + x1
    m2 = jnp.mean(y2, axis=-1, keepdims=True)
    c2 = y2 - m2
    var2 = jnp.mean(c2 * c2, axis=-1, keepdims=True)
    x2 = c2 * jax.lax.rsqrt(var2 + EPS)

    x_scr[...] = x2                                 # carry to next layer (stays in VMEM)

    @pl.when(layer == pl.num_programs(0) - 1)       # finalize: single HBM writeback
    def _():
        out_ref[...] = x2


# ---------------------------------------------------------------------------
# pallas_call wrapper
# ---------------------------------------------------------------------------
@jax.jit
def encoder_forward(x, params, pos_table):
    B, L, D = x.shape
    BL = B * L
    x_flat = x.reshape(BL, D)

    out_flat, attn_flat = pl.pallas_call(
        encoder_kernel,
        grid=(N_LAYERS,),
        in_specs=[
            pl.BlockSpec((BL, D), lambda l: (0, 0)),                   # x
            pl.BlockSpec((SEQ, D), lambda l: (0, 0)),                  # pos table [L, D]
            pl.BlockSpec((1, D, 3 * HDK), lambda l: (l, 0, 0)),        # wqkv (bf16)
            pl.BlockSpec((1, 1, 3 * HDK), lambda l: (l, 0, 0)),        # bqkv
            pl.BlockSpec((1, HDK, D), lambda l: (l, 0, 0)),            # wo   (bf16)
            pl.BlockSpec((1, 1, D), lambda l: (l, 0, 0)),              # bo
            pl.BlockSpec((1, D, D_FF), lambda l: (l, 0, 0)),           # w1   (bf16)
            pl.BlockSpec((1, 1, D_FF), lambda l: (l, 0, 0)),           # b1
            pl.BlockSpec((1, D_FF, D), lambda l: (l, 0, 0)),           # w2   (bf16)
            pl.BlockSpec((1, 1, D), lambda l: (l, 0, 0)),              # b2
        ],
        out_specs=(
            pl.BlockSpec((BL, D), lambda l: (0, 0)),                   # final activations
            pl.BlockSpec((1, SEQ, BATCH * N_HEADS * SEQ),              # attn, lane-dense
                         lambda l: (l, 0, 0)),
        ),
        out_shape=(
            jax.ShapeDtypeStruct((BL, D), jnp.float32),
            jax.ShapeDtypeStruct((N_LAYERS, SEQ, BATCH * N_HEADS * SEQ), jnp.float32),
        ),
        scratch_shapes=[
            pltpu.VMEM((BL, D), jnp.float32),     # activation carried across layers
            pltpu.VMEM((BL, HDK), BF16),          # attention context assembly (bf16)
        ],
        compiler_params=pltpu.CompilerParams(
            dimension_semantics=("arbitrary",),   # layer loop carries state -> sequential
        ),
    )(x_flat, pos_table,
      params["wqkv"], params["bqkv"], params["wo"], params["bo"],
      params["w1"], params["b1"], params["w2"], params["b2"])

    out = out_flat.reshape(B, L, D)
    # attn_flat[l, q, (b*H + h)*L + k] -> [l, b, h, q, k]
    attn = attn_flat.reshape(N_LAYERS, L, B, N_HEADS, L).transpose(0, 2, 3, 1, 4)
    return out, [attn[l] for l in range(N_LAYERS)]


# ---------------------------------------------------------------------------
# deterministic parameter init (mimics torch default uniform(+-1/sqrt(fan_in)))
# weights are stacked per-layer and stored in bf16 (MXU-native), biases in f32.
# ---------------------------------------------------------------------------
def init_params(key):
    def u(k, shape, fan_in):
        bound = 1.0 / float(np.sqrt(fan_in))
        return jax.random.uniform(k, shape, jnp.float32, -bound, bound)

    acc = {n: [] for n in ("wqkv", "bqkv", "wo", "bo", "w1", "b1", "w2", "b2")}
    for li in range(N_LAYERS):
        ks = jax.random.split(jax.random.fold_in(key, li), 12)
        wq, bq = u(ks[0], (D_MODEL, HDK), D_MODEL), u(ks[1], (1, HDK), D_MODEL)
        wk, bk = u(ks[2], (D_MODEL, HDK), D_MODEL), u(ks[3], (1, HDK), D_MODEL)
        wv, bv = u(ks[4], (D_MODEL, HDK), D_MODEL), u(ks[5], (1, HDK), D_MODEL)
        acc["wqkv"].append(jnp.concatenate([wq, wk, wv], axis=1))
        acc["bqkv"].append(jnp.concatenate([bq, bk, bv], axis=1))
        acc["wo"].append(u(ks[6], (HDK, D_MODEL), HDK))
        acc["bo"].append(u(ks[7], (1, D_MODEL), HDK))
        acc["w1"].append(u(ks[8], (D_MODEL, D_FF), D_MODEL))
        acc["b1"].append(u(ks[9], (1, D_FF), D_MODEL))
        acc["w2"].append(u(ks[10], (D_FF, D_MODEL), D_FF))
        acc["b2"].append(u(ks[11], (1, D_MODEL), D_FF))

    params = {k: jnp.stack(v) for k, v in acc.items()}
    for k in ("wqkv", "wo", "w1", "w2"):
        params[k] = params[k].astype(BF16)          # halve weight DMA bytes
    return params


# ---------------------------------------------------------------------------
# pure-JAX reference (mirrors the PyTorch forward; dropout = identity; same
# mixed-precision policy: bf16 matmul operands, f32 accumulation)
# ---------------------------------------------------------------------------
def reference_forward(x, params, pos_table):
    def layernorm(y):
        m = jnp.mean(y, axis=-1, keepdims=True)
        c = y - m
        v = jnp.mean(c * c, axis=-1, keepdims=True)
        return c * jax.lax.rsqrt(v + EPS)

    def mm(a, w, b):
        return jnp.dot(a.astype(BF16), w.astype(BF16),
                       preferred_element_type=jnp.float32) + b

    B, L, D = x.shape
    x = (x + pos_table[None]).reshape(B * L, D)
    attns = []
    for l in range(N_LAYERS):
        qkv = mm(x, params["wqkv"][l], params["bqkv"][l])              # [BL, 3*HDK]
        q, k, v = (qkv[:, i * HDK:(i + 1) * HDK]
                   .reshape(B, L, N_HEADS, QKV_DIM).transpose(0, 2, 1, 3)
                   for i in range(3))
        s = jnp.einsum("bhqd,bhkd->bhqk", q.astype(BF16), k.astype(BF16),
                       preferred_element_type=jnp.float32) / np.sqrt(QKV_DIM)
        a = jax.nn.softmax(s, axis=-1)
        ctx = jnp.einsum("bhqk,bhkd->bhqd", a.astype(BF16), v.astype(BF16),
                         preferred_element_type=jnp.float32)
        ctx = ctx.transpose(0, 2, 1, 3).reshape(B * L, HDK)
        x = layernorm(mm(ctx.astype(BF16), params["wo"][l], params["bo"][l]) + x)
        h = jax.nn.relu(mm(x, params["w1"][l], params["b1"][l]))
        x = layernorm(mm(h, params["w2"][l], params["b2"][l]) + x)
        attns.append(a)
    return x.reshape(B, L, D), attns


if __name__ == "__main__":
    key = jax.random.PRNGKey(0)
    k_in, k_par = jax.random.split(key)
    encoder_out = jax.random.normal(k_in, (BATCH, SEQ, D_MODEL), dtype=jnp.float32)
    params = init_params(k_par)
    pos_table = get_position_embedding_table()

    out, attns = encoder_forward(encoder_out, params, pos_table)
    out = jax.block_until_ready(out)
    attns = [jax.block_until_ready(a) for a in attns]

    # sanity check against pure-JAX reference
    ref_out, ref_attns = reference_forward(encoder_out, params, pos_table)
    np.testing.assert_allclose(np.asarray(out), np.asarray(ref_out), rtol=1e-2, atol=1e-2)
    for a, ra in zip(attns, ref_attns):
        np.testing.assert_allclose(np.asarray(a), np.asarray(ra), rtol=1e-2, atol=1e-2)

    assert out.shape == (BATCH, SEQ, D_MODEL)
    assert all(a.shape == (BATCH, N_HEADS, SEQ, SEQ) for a in attns)
    print("KERNEL_OK")
</pallas_src>

<mosaic_0001>
module attributes {stable_mosaic.version = 11 : i64} {
  func.func @encoder_kernel(%arg0: i32, %arg1: memref<32x128xf32, #tpu.memory_space<vmem>>, %arg2: memref<16x128xf32, #tpu.memory_space<vmem>>, %arg3: memref<1x128x768xbf16, #tpu.memory_space<vmem>>, %arg4: memref<1x1x768xf32, #tpu.memory_space<vmem>>, %arg5: memref<1x256x128xbf16, #tpu.memory_space<vmem>>, %arg6: memref<1x1x128xf32, #tpu.memory_space<vmem>>, %arg7: memref<1x128x256xbf16, #tpu.memory_space<vmem>>, %arg8: memref<1x1x256xf32, #tpu.memory_space<vmem>>, %arg9: memref<1x256x128xbf16, #tpu.memory_space<vmem>>, %arg10: memref<1x1x128xf32, #tpu.memory_space<vmem>>, %arg11: memref<32x128xf32, #tpu.memory_space<vmem>>, %arg12: memref<1x16x128xf32, #tpu.memory_space<vmem>>, %arg13: memref<32x128xf32, #tpu.memory_space<vmem>>, %arg14: memref<32x256xbf16, #tpu.memory_space<vmem>>) attributes {dimension_semantics = [#tpu.dimension_semantics<arbitrary>], iteration_bounds = array<i64: 2>, scalar_prefetch = 0 : i64, scratch_operands = 2 : i64, tpu.core_type = #tpu.core_type<tc>, window_params = [{pipeline_mode = #tpu.pipeline_mode<synchronous>, transform_indices = @transform_0, window_bounds = array<i64: 32, 128>}, {pipeline_mode = #tpu.pipeline_mode<synchronous>, transform_indices = @transform_1, window_bounds = array<i64: 16, 128>}, {transform_indices = @transform_2, window_bounds = array<i64: 1, 128, 768>}, {transform_indices = @transform_3, window_bounds = array<i64: 1, 1, 768>}, {transform_indices = @transform_4, window_bounds = array<i64: 1, 256, 128>}, {transform_indices = @transform_5, window_bounds = array<i64: 1, 1, 128>}, {transform_indices = @transform_6, window_bounds = array<i64: 1, 128, 256>}, {transform_indices = @transform_7, window_bounds = array<i64: 1, 1, 256>}, {transform_indices = @transform_8, window_bounds = array<i64: 1, 256, 128>}, {transform_indices = @transform_9, window_bounds = array<i64: 1, 1, 128>}, {pipeline_mode = #tpu.pipeline_mode<synchronous>, transform_indices = @transform_10, window_bounds = array<i64: 32, 128>}, {transform_indices = @transform_11, window_bounds = array<i64: 1, 16, 128>}]} {
    %c0_i32 = arith.constant 0 : i32
    %0 = arith.cmpi eq, %arg0, %c0_i32 : i32
    %1 = arith.extui %0 : i1 to i32
    %c0_i32_0 = arith.constant 0 : i32
    %2 = arith.cmpi ne, %1, %c0_i32_0 : i32
    scf.if %2 {
      %c0_116 = arith.constant 0 : index
      %c0_117 = arith.constant 0 : index
      %284 = vector.load %arg1[%c0_116, %c0_117] : memref<32x128xf32, #tpu.memory_space<vmem>>, vector<16x128xf32>
      %c0_118 = arith.constant 0 : index
      %c0_119 = arith.constant 0 : index
      %285 = vector.load %arg2[%c0_118, %c0_119] : memref<16x128xf32, #tpu.memory_space<vmem>>, vector<16x128xf32>
      %286 = arith.addf %284, %285 : vector<16x128xf32>
      %c0_120 = arith.constant 0 : index
      %c0_121 = arith.constant 0 : index
      %287 = vector.load %arg13[%c0_120, %c0_121] : memref<32x128xf32, #tpu.memory_space<vmem>>, vector<16x128xf32>
      tpu.vector_store %arg13[%c0_120, %c0_121], %286 {strides = array<i32>} : memref<32x128xf32, #tpu.memory_space<vmem>>, vector<16x128xf32>,
      %c16_122 = arith.constant 16 : index
      %c0_123 = arith.constant 0 : index
      %288 = vector.load %arg1[%c16_122, %c0_123] : memref<32x128xf32, #tpu.memory_space<vmem>>, vector<16x128xf32>
      %c0_124 = arith.constant 0 : index
      %c0_125 = arith.constant 0 : index
      %289 = vector.load %arg2[%c0_124, %c0_125] : memref<16x128xf32, #tpu.memory_space<vmem>>, vector<16x128xf32>
      %290 = arith.addf %288, %289 : vector<16x128xf32>
      %c16_126 = arith.constant 16 : index
      %c0_127 = arith.constant 0 : index
      %291 = vector.load %arg13[%c16_126, %c0_127] : memref<32x128xf32, #tpu.memory_space<vmem>>, vector<16x128xf32>
      tpu.vector_store %arg13[%c16_126, %c0_127], %290 {strides = array<i32>} : memref<32x128xf32, #tpu.memory_space<vmem>>, vector<16x128xf32>,
    } else {
    }
    %c0 = arith.constant 0 : index
    %c0_1 = arith.constant 0 : index
    %3 = vector.load %arg13[%c0, %c0_1] : memref<32x128xf32, #tpu.memory_space<vmem>>, vector<32x128xf32>
    %4 = arith.truncf %3 : vector<32x128xf32> to vector<32x128xbf16>
    %c0_2 = arith.constant 0 : index
    %c0_3 = arith.constant 0 : index
    %c0_4 = arith.constant 0 : index
    %5 = vector.load %arg3[%c0_2, %c0_3, %c0_4] : memref<1x128x768xbf16, #tpu.memory_space<vmem>>, vector<1x128x768xbf16>
    %6 = vector.shape_cast %5 : vector<1x128x768xbf16> to vector<128x768xbf16>
    %cst = arith.constant dense<0.000000e+00> : vector<32x768xf32>
    %7 = tpu.matmul %4, %6, %cst {dimension_numbers = #tpu.dot_dimension_numbers<[1], [0], [0], [1], [0, 0, 1, 1], [], []>} : vector<32x128xbf16>, vector<128x768xbf16>, vector<32x768xf32> -> vector<32x768xf32>
    %c0_5 = arith.constant 0 : index
    %c0_6 = arith.constant 0 : index
    %c0_7 = arith.constant 0 : index
    %8 = vector.load %arg4[%c0_5, %c0_6, %c0_7] : memref<1x1x768xf32, #tpu.memory_space<vmem>>, vector<1x1x768xf32>
    %9 = vector.shape_cast %8 : vector<1x1x768xf32> to vector<1x768xf32>
    %10 = vector.broadcast %9 : vector<1x768xf32> to vector<32x768xf32>
    %11 = arith.addf %7, %10 : vector<32x768xf32>
    %12 = vector.extract_strided_slice %11 {offsets = [0, 0], sizes = [16, 64], strides = [1, 1]} : vector<32x768xf32> to vector<16x64xf32>
    %13 = vector.extract_strided_slice %11 {offsets = [0, 256], sizes = [16, 64], strides = [1, 1]} : vector<32x768xf32> to vector<16x64xf32>
    %14 = vector.extract_strided_slice %11 {offsets = [0, 512], sizes = [16, 64], strides = [1, 1]} : vector<32x768xf32> to vector<16x64xf32>
    %15 = arith.truncf %12 : vector<16x64xf32> to vector<16x64xbf16>
    %16 = arith.truncf %13 : vector<16x64xf32> to vector<16x64xbf16>
    "tpu.trace_start"() <{level = 10 : i32, message = "qd,kd->qk"}> : () -> ()
    %cst_8 = arith.constant dense<0.000000e+00> : vector<16x16xf32>
    %17 = tpu.matmul %15, %16, %cst_8 {dimension_numbers = #tpu.dot_dimension_numbers<[1], [1], [0], [0], [0, 0, 1, 0], [], []>} : vector<16x64xbf16>, vector<16x64xbf16>, vector<16x16xf32> -> vector<16x16xf32>
    "tpu.trace_stop"() : () -> ()
    %cst_9 = arith.constant 1.250000e-01 : f32
    %18 = vector.broadcast %cst_9 : f32 to vector<16x16xf32>
    %19 = arith.mulf %17, %18 : vector<16x16xf32>
    %cst_10 = arith.constant dense<0xFF800000> : vector<16xf32>
    %20 = vector.multi_reduction <maximumf>, %19, %cst_10 [1] : vector<16x16xf32> to vector<16xf32>
    %21 = vector.shape_cast %20 : vector<16xf32> to vector<16x1xf32>
    %22 = vector.broadcast %21 : vector<16x1xf32> to vector<16x16xf32>
    %23 = arith.subf %19, %22 : vector<16x16xf32>
    %24 = math.exp %23 : vector<16x16xf32>
    %cst_11 = arith.constant dense<0.000000e+00> : vector<16xf32>
    %25 = vector.multi_reduction <add>, %24, %cst_11 [1] : vector<16x16xf32> to vector<16xf32>
    %26 = vector.shape_cast %25 : vector<16xf32> to vector<16x1xf32>
    %27 = tpu.reciprocal %26 {approx = true} : vector<16x1xf32> -> vector<16x1xf32>
    %28 = vector.broadcast %27 : vector<16x1xf32> to vector<16x16xf32>
    %29 = arith.mulf %24, %28 : vector<16x16xf32>
    %c0_12 = arith.constant 0 : index
    %c0_13 = arith.constant 0 : index
    %c0_14 = arith.constant 0 : index
    %30 = vector.load %arg12[%c0_12, %c0_13, %c0_14] : memref<1x16x128xf32, #tpu.memory_space<vmem>>, vector<1x16x16xf32>
    %31 = vector.shape_cast %30 : vector<1x16x16xf32> to vector<16x16xf32>
    %32 = vector.shape_cast %29 : vector<16x16xf32> to vector<1x16x16xf32>
    tpu.vector_store %arg12[%c0_12, %c0_13, %c0_14], %32 {strides = array<i32>} : memref<1x16x128xf32, #tpu.memory_space<vmem>>, vector<1x16x16xf32>,
    %33 = arith.truncf %29 : vector<16x16xf32> to vector<16x16xbf16>
    %34 = arith.truncf %14 : vector<16x64xf32> to vector<16x64xbf16>
    %cst_15 = arith.constant dense<0.000000e+00> : vector<16x64xf32>
    %35 = tpu.matmul %33, %34, %cst_15 {dimension_numbers = #tpu.dot_dimension_numbers<[1], [0], [0], [1], [0, 0, 1, 1], [], []>} : vector<16x16xbf16>, vector<16x64xbf16>, vector<16x64xf32> -> vector<16x64xf32>
    %36 = arith.truncf %35 : vector<16x64xf32> to vector<16x64xbf16>
    %c0_16 = arith.constant 0 : index
    %c0_17 = arith.constant 0 : index
    %37 = vector.load %arg14[%c0_16, %c0_17] : memref<32x256xbf16, #tpu.memory_space<vmem>>, vector<16x64xbf16>
    tpu.vector_store %arg14[%c0_16, %c0_17], %36 {strides = array<i32>} : memref<32x256xbf16, #tpu.memory_space<vmem>>, vector<16x64xbf16>,
    %38 = vector.extract_strided_slice %11 {offsets = [0, 64], sizes = [16, 64], strides = [1, 1]} : vector<32x768xf32> to vector<16x64xf32>
    %39 = vector.extract_strided_slice %11 {offsets = [0, 320], sizes = [16, 64], strides = [1, 1]} : vector<32x768xf32> to vector<16x64xf32>
    %40 = vector.extract_strided_slice %11 {offsets = [0, 576], sizes = [16, 64], strides = [1, 1]} : vector<32x768xf32> to vector<16x64xf32>
    %41 = arith.truncf %38 : vector<16x64xf32> to vector<16x64xbf16>
    %42 = arith.truncf %39 : vector<16x64xf32> to vector<16x64xbf16>
    "tpu.trace_start"() <{level = 10 : i32, message = "qd,kd->qk"}> : () -> ()
    %cst_18 = arith.constant dense<0.000000e+00> : vector<16x16xf32>
    %43 = tpu.matmul %41, %42, %cst_18 {dimension_numbers = #tpu.dot_dimension_numbers<[1], [1], [0], [0], [0, 0, 1, 0], [], []>} : vector<16x64xbf16>, vector<16x64xbf16>, vector<16x16xf32> -> vector<16x16xf32>
    "tpu.trace_stop"() : () -> ()
    %cst_19 = arith.constant 1.250000e-01 : f32
    %44 = vector.broadcast %cst_19 : f32 to vector<16x16xf32>
    %45 = arith.mulf %43, %44 : vector<16x16xf32>
    %cst_20 = arith.constant dense<0xFF800000> : vector<16xf32>
    %46 = vector.multi_reduction <maximumf>, %45, %cst_20 [1] : vector<16x16xf32> to vector<16xf32>
    %47 = vector.shape_cast %46 : vector<16xf32> to vector<16x1xf32>
    %48 = vector.broadcast %47 : vector<16x1xf32> to vector<16x16xf32>
    %49 = arith.subf %45, %48 : vector<16x16xf32>
    %50 = math.exp %49 : vector<16x16xf32>
    %cst_21 = arith.constant dense<0.000000e+00> : vector<16xf32>
    %51 = vector.multi_reduction <add>, %50, %cst_21 [1] : vector<16x16xf32> to vector<16xf32>
    %52 = vector.shape_cast %51 : vector<16xf32> to vector<16x1xf32>
    %53 = tpu.reciprocal %52 {approx = true} : vector<16x1xf32> -> vector<16x1xf32>
    %54 = vector.broadcast %53 : vector<16x1xf32> to vector<16x16xf32>
    %55 = arith.mulf %50, %54 : vector<16x16xf32>
    %c0_22 = arith.constant 0 : index
    %c0_23 = arith.constant 0 : index
    %c16 = arith.constant 16 : index
    %56 = vector.load %arg12[%c0_22, %c0_23, %c16] : memref<1x16x128xf32, #tpu.memory_space<vmem>>, vector<1x16x16xf32>
    %57 = vector.shape_cast %56 : vector<1x16x16xf32> to vector<16x16xf32>
    %58 = vector.shape_cast %55 : vector<16x16xf32> to vector<1x16x16xf32>
    tpu.vector_store %arg12[%c0_22, %c0_23, %c16], %58 {strides = array<i32>} : memref<1x16x128xf32, #tpu.memory_space<vmem>>, vector<1x16x16xf32>,
    %59 = arith.truncf %55 : vector<16x16xf32> to vector<16x16xbf16>
    %60 = arith.truncf %40 : vector<16x64xf32> to vector<16x64xbf16>
    %cst_24 = arith.constant dense<0.000000e+00> : vector<16x64xf32>
    %61 = tpu.matmul %59, %60, %cst_24 {dimension_numbers = #tpu.dot_dimension_numbers<[1], [0], [0], [1], [0, 0, 1, 1], [], []>} : vector<16x16xbf16>, vector<16x64xbf16>, vector<16x64xf32> -> vector<16x64xf32>
    %62 = arith.truncf %61 : vector<16x64xf32> to vector<16x64xbf16>
    %c0_25 = arith.constant 0 : index
    %c64 = arith.constant 64 : index
    %63 = vector.load %arg14[%c0_25, %c64] : memref<32x256xbf16, #tpu.memory_space<vmem>>, vector<16x64xbf16>
    tpu.vector_store %arg14[%c0_25, %c64], %62 {strides = array<i32>} : memref<32x256xbf16, #tpu.memory_space<vmem>>, vector<16x64xbf16>,
    %64 = vector.extract_strided_slice %11 {offsets = [0, 128], sizes = [16, 64], strides = [1, 1]} : vector<32x768xf32> to vector<16x64xf32>
    %65 = vector.extract_strided_slice %11 {offsets = [0, 384], sizes = [16, 64], strides = [1, 1]} : vector<32x768xf32> to vector<16x64xf32>
    %66 = vector.extract_strided_slice %11 {offsets = [0, 640], sizes = [16, 64], strides = [1, 1]} : vector<32x768xf32> to vector<16x64xf32>
    %67 = arith.truncf %64 : vector<16x64xf32> to vector<16x64xbf16>
    %68 = arith.truncf %65 : vector<16x64xf32> to vector<16x64xbf16>
    "tpu.trace_start"() <{level = 10 : i32, message = "qd,kd->qk"}> : () -> ()
    %cst_26 = arith.constant dense<0.000000e+00> : vector<16x16xf32>
    %69 = tpu.matmul %67, %68, %cst_26 {dimension_numbers = #tpu.dot_dimension_numbers<[1], [1], [0], [0], [0, 0, 1, 0], [], []>} : vector<16x64xbf16>, vector<16x64xbf16>, vector<16x16xf32> -> vector<16x16xf32>
    "tpu.trace_stop"() : () -> ()
    %cst_27 = arith.constant 1.250000e-01 : f32
    %70 = vector.broadcast %cst_27 : f32 to vector<16x16xf32>
    %71 = arith.mulf %69, %70 : vector<16x16xf32>
    %cst_28 = arith.constant dense<0xFF800000> : vector<16xf32>
    %72 = vector.multi_reduction <maximumf>, %71, %cst_28 [1] : vector<16x16xf32> to vector<16xf32>
    %73 = vector.shape_cast %72 : vector<16xf32> to vector<16x1xf32>
    %74 = vector.broadcast %73 : vector<16x1xf32> to vector<16x16xf32>
    %75 = arith.subf %71, %74 : vector<16x16xf32>
    %76 = math.exp %75 : vector<16x16xf32>
    %cst_29 = arith.constant dense<0.000000e+00> : vector<16xf32>
    %77 = vector.multi_reduction <add>, %76, %cst_29 [1] : vector<16x16xf32> to vector<16xf32>
    %78 = vector.shape_cast %77 : vector<16xf32> to vector<16x1xf32>
    %79 = tpu.reciprocal %78 {approx = true} : vector<16x1xf32> -> vector<16x1xf32>
    %80 = vector.broadcast %79 : vector<16x1xf32> to vector<16x16xf32>
    %81 = arith.mulf %76, %80 : vector<16x16xf32>
    %c0_30 = arith.constant 0 : index
    %c0_31 = arith.constant 0 : index
    %c32 = arith.constant 32 : index
    %82 = vector.load %arg12[%c0_30, %c0_31, %c32] : memref<1x16x128xf32, #tpu.memory_space<vmem>>, vector<1x16x16xf32>
    %83 = vector.shape_cast %82 : vector<1x16x16xf32> to vector<16x16xf32>
    %84 = vector.shape_cast %81 : vector<16x16xf32> to vector<1x16x16xf32>
    tpu.vector_store %arg12[%c0_30, %c0_31, %c32], %84 {strides = array<i32>} : memref<1x16x128xf32, #tpu.memory_space<vmem>>, vector<1x16x16xf32>,
    %85 = arith.truncf %81 : vector<16x16xf32> to vector<16x16xbf16>
    %86 = arith.truncf %66 : vector<16x64xf32> to vector<16x64xbf16>
    %cst_32 = arith.constant dense<0.000000e+00> : vector<16x64xf32>
    %87 = tpu.matmul %85, %86, %cst_32 {dimension_numbers = #tpu.dot_dimension_numbers<[1], [0], [0], [1], [0, 0, 1, 1], [], []>} : vector<16x16xbf16>, vector<16x64xbf16>, vector<16x64xf32> -> vector<16x64xf32>
    %88 = arith.truncf %87 : vector<16x64xf32> to vector<16x64xbf16>
    %c0_33 = arith.constant 0 : index
    %c128 = arith.constant 128 : index
    %89 = vector.load %arg14[%c0_33, %c128] : memref<32x256xbf16, #tpu.memory_space<vmem>>, vector<16x64xbf16>
    tpu.vector_store %arg14[%c0_33, %c128], %88 {strides = array<i32>} : memref<32x256xbf16, #tpu.memory_space<vmem>>, vector<16x64xbf16>,
    %90 = vector.extract_strided_slice %11 {offsets = [0, 192], sizes = [16, 64], strides = [1, 1]} : vector<32x768xf32> to vector<16x64xf32>
    %91 = vector.extract_strided_slice %11 {offsets = [0, 448], sizes = [16, 64], strides = [1, 1]} : vector<32x768xf32> to vector<16x64xf32>
    %92 = vector.extract_strided_slice %11 {offsets = [0, 704], sizes = [16, 64], strides = [1, 1]} : vector<32x768xf32> to vector<16x64xf32>
    %93 = arith.truncf %90 : vector<16x64xf32> to vector<16x64xbf16>
    %94 = arith.truncf %91 : vector<16x64xf32> to vector<16x64xbf16>
    "tpu.trace_start"() <{level = 10 : i32, message = "qd,kd->qk"}> : () -> ()
    %cst_34 = arith.constant dense<0.000000e+00> : vector<16x16xf32>
    %95 = tpu.matmul %93, %94, %cst_34 {dimension_numbers = #tpu.dot_dimension_numbers<[1], [1], [0], [0], [0, 0, 1, 0], [], []>} : vector<16x64xbf16>, vector<16x64xbf16>, vector<16x16xf32> -> vector<16x16xf32>
    "tpu.trace_stop"() : () -> ()
    %cst_35 = arith.constant 1.250000e-01 : f32
    %96 = vector.broadcast %cst_35 : f32 to vector<16x16xf32>
    %97 = arith.mulf %95, %96 : vector<16x16xf32>
    %cst_36 = arith.constant dense<0xFF800000> : vector<16xf32>
    %98 = vector.multi_reduction <maximumf>, %97, %cst_36 [1] : vector<16x16xf32> to vector<16xf32>
    %99 = vector.shape_cast %98 : vector<16xf32> to vector<16x1xf32>
    %100 = vector.broadcast %99 : vector<16x1xf32> to vector<16x16xf32>
    %101 = arith.subf %97, %100 : vector<16x16xf32>
    %102 = math.exp %101 : vector<16x16xf32>
    %cst_37 = arith.constant dense<0.000000e+00> : vector<16xf32>
    %103 = vector.multi_reduction <add>, %102, %cst_37 [1] : vector<16x16xf32> to vector<16xf32>
    %104 = vector.shape_cast %103 : vector<16xf32> to vector<16x1xf32>
    %105 = tpu.reciprocal %104 {approx = true} : vector<16x1xf32> -> vector<16x1xf32>
    %106 = vector.broadcast %105 : vector<16x1xf32> to vector<16x16xf32>
    %107 = arith.mulf %102, %106 : vector<16x16xf32>
    %c0_38 = arith.constant 0 : index
    %c0_39 = arith.constant 0 : index
    %c48 = arith.constant 48 : index
    %108 = vector.load %arg12[%c0_38, %c0_39, %c48] : memref<1x16x128xf32, #tpu.memory_space<vmem>>, vector<1x16x16xf32>
    %109 = vector.shape_cast %108 : vector<1x16x16xf32> to vector<16x16xf32>
    %110 = vector.shape_cast %107 : vector<16x16xf32> to vector<1x16x16xf32>
    tpu.vector_store %arg12[%c0_38, %c0_39, %c48], %110 {strides = array<i32>} : memref<1x16x128xf32, #tpu.memory_space<vmem>>, vector<1x16x16xf32>,
    %111 = arith.truncf %107 : vector<16x16xf32> to vector<16x16xbf16>
    %112 = arith.truncf %92 : vector<16x64xf32> to vector<16x64xbf16>
    %cst_40 = arith.constant dense<0.000000e+00> : vector<16x64xf32>
    %113 = tpu.matmul %111, %112, %cst_40 {dimension_numbers = #tpu.dot_dimension_numbers<[1], [0], [0], [1], [0, 0, 1, 1], [], []>} : vector<16x16xbf16>, vector<16x64xbf16>, vector<16x64xf32> -> vector<16x64xf32>
    %114 = arith.truncf %113 : vector<16x64xf32> to vector<16x64xbf16>
    %c0_41 = arith.constant 0 : index
    %c192 = arith.constant 192 : index
    %115 = vector.load %arg14[%c0_41, %c192] : memref<32x256xbf16, #tpu.memory_space<vmem>>, vector<16x64xbf16>
    tpu.vector_store %arg14[%c0_41, %c192], %114 {strides = array<i32>} : memref<32x256xbf16, #tpu.memory_space<vmem>>, vector<16x64xbf16>,
    %116 = vector.extract_strided_slice %11 {offsets = [16, 0], sizes = [16, 64], strides = [1, 1]} : vector<32x768xf32> to vector<16x64xf32>
    %117 = vector.extract_strided_slice %11 {offsets = [16, 256], sizes = [16, 64], strides = [1, 1]} : vector<32x768xf32> to vector<16x64xf32>
    %118 = vector.extract_strided_slice %11 {offsets = [16, 512], sizes = [16, 64], strides = [1, 1]} : vector<32x768xf32> to vector<16x64xf32>
    %119 = arith.truncf %116 : vector<16x64xf32> to vector<16x64xbf16>
    %120 = arith.truncf %117 : vector<16x64xf32> to vector<16x64xbf16>
    "tpu.trace_start"() <{level = 10 : i32, message = "qd,kd->qk"}> : () -> ()
    %cst_42 = arith.constant dense<0.000000e+00> : vector<16x16xf32>
    %121 = tpu.matmul %119, %120, %cst_42 {dimension_numbers = #tpu.dot_dimension_numbers<[1], [1], [0], [0], [0, 0, 1, 0], [], []>} : vector<16x64xbf16>, vector<16x64xbf16>, vector<16x16xf32> -> vector<16x16xf32>
    "tpu.trace_stop"() : () -> ()
    %cst_43 = arith.constant 1.250000e-01 : f32
    %122 = vector.broadcast %cst_43 : f32 to vector<16x16xf32>
    %123 = arith.mulf %121, %122 : vector<16x16xf32>
    %cst_44 = arith.constant dense<0xFF800000> : vector<16xf32>
    %124 = vector.multi_reduction <maximumf>, %123, %cst_44 [1] : vector<16x16xf32> to vector<16xf32>
    %125 = vector.shape_cast %124 : vector<16xf32> to vector<16x1xf32>
    %126 = vector.broadcast %125 : vector<16x1xf32> to vector<16x16xf32>
    %127 = arith.subf %123, %126 : vector<16x16xf32>
    %128 = math.exp %127 : vector<16x16xf32>
    %cst_45 = arith.constant dense<0.000000e+00> : vector<16xf32>
    %129 = vector.multi_reduction <add>, %128, %cst_45 [1] : vector<16x16xf32> to vector<16xf32>
    %130 = vector.shape_cast %129 : vector<16xf32> to vector<16x1xf32>
    %131 = tpu.reciprocal %130 {approx = true} : vector<16x1xf32> -> vector<16x1xf32>
    %132 = vector.broadcast %131 : vector<16x1xf32> to vector<16x16xf32>
    %133 = arith.mulf %128, %132 : vector<16x16xf32>
    %c0_46 = arith.constant 0 : index
    %c0_47 = arith.constant 0 : index
    %c64_48 = arith.constant 64 : index
    %134 = vector.load %arg12[%c0_46, %c0_47, %c64_48] : memref<1x16x128xf32, #tpu.memory_space<vmem>>, vector<1x16x16xf32>
    %135 = vector.shape_cast %134 : vector<1x16x16xf32> to vector<16x16xf32>
    %136 = vector.shape_cast %133 : vector<16x16xf32> to vector<1x16x16xf32>
    tpu.vector_store %arg12[%c0_46, %c0_47, %c64_48], %136 {strides = array<i32>} : memref<1x16x128xf32, #tpu.memory_space<vmem>>, vector<1x16x16xf32>,
    %137 = arith.truncf %133 : vector<16x16xf32> to vector<16x16xbf16>
    %138 = arith.truncf %118 : vector<16x64xf32> to vector<16x64xbf16>
    %cst_49 = arith.constant dense<0.000000e+00> : vector<16x64xf32>
    %139 = tpu.matmul %137, %138, %cst_49 {dimension_numbers = #tpu.dot_dimension_numbers<[1], [0], [0], [1], [0, 0, 1, 1], [], []>} : vector<16x16xbf16>, vector<16x64xbf16>, vector<16x64xf32> -> vector<16x64xf32>
    %140 = arith.truncf %139 : vector<16x64xf32> to vector<16x64xbf16>
    %c16_50 = arith.constant 16 : index
    %c0_51 = arith.constant 0 : index
    %141 = vector.load %arg14[%c16_50, %c0_51] : memref<32x256xbf16, #tpu.memory_space<vmem>>, vector<16x64xbf16>
    tpu.vector_store %arg14[%c16_50, %c0_51], %140 {strides = array<i32>} : memref<32x256xbf16, #tpu.memory_space<vmem>>, vector<16x64xbf16>,
    %142 = vector.extract_strided_slice %11 {offsets = [16, 64], sizes = [16, 64], strides = [1, 1]} : vector<32x768xf32> to vector<16x64xf32>
    %143 = vector.extract_strided_slice %11 {offsets = [16, 320], sizes = [16, 64], strides = [1, 1]} : vector<32x768xf32> to vector<16x64xf32>
    %144 = vector.extract_strided_slice %11 {offsets = [16, 576], sizes = [16, 64], strides = [1, 1]} : vector<32x768xf32> to vector<16x64xf32>
    %145 = arith.truncf %142 : vector<16x64xf32> to vector<16x64xbf16>
    %146 = arith.truncf %143 : vector<16x64xf32> to vector<16x64xbf16>
    "tpu.trace_start"() <{level = 10 : i32, message = "qd,kd->qk"}> : () -> ()
    %cst_52 = arith.constant dense<0.000000e+00> : vector<16x16xf32>
    %147 = tpu.matmul %145, %146, %cst_52 {dimension_numbers = #tpu.dot_dimension_numbers<[1], [1], [0], [0], [0, 0, 1, 0], [], []>} : vector<16x64xbf16>, vector<16x64xbf16>, vector<16x16xf32> -> vector<16x16xf32>
    "tpu.trace_stop"() : () -> ()
    %cst_53 = arith.constant 1.250000e-01 : f32
    %148 = vector.broadcast %cst_53 : f32 to vector<16x16xf32>
    %149 = arith.mulf %147, %148 : vector<16x16xf32>
    %cst_54 = arith.constant dense<0xFF800000> : vector<16xf32>
    %150 = vector.multi_reduction <maximumf>, %149, %cst_54 [1] : vector<16x16xf32> to vector<16xf32>
    %151 = vector.shape_cast %150 : vector<16xf32> to vector<16x1xf32>
    %152 = vector.broadcast %151 : vector<16x1xf32> to vector<16x16xf32>
    %153 = arith.subf %149, %152 : vector<16x16xf32>
    %154 = math.exp %153 : vector<16x16xf32>
    %cst_55 = arith.constant dense<0.000000e+00> : vector<16xf32>
    %155 = vector.multi_reduction <add>, %154, %cst_55 [1] : vector<16x16xf32> to vector<16xf32>
    %156 = vector.shape_cast %155 : vector<16xf32> to vector<16x1xf32>
    %157 = tpu.reciprocal %156 {approx = true} : vector<16x1xf32> -> vector<16x1xf32>
    %158 = vector.broadcast %157 : vector<16x1xf32> to vector<16x16xf32>
    %159 = arith.mulf %154, %158 : vector<16x16xf32>
    %c0_56 = arith.constant 0 : index
    %c0_57 = arith.constant 0 : index
    %c80 = arith.constant 80 : index
    %160 = vector.load %arg12[%c0_56, %c0_57, %c80] : memref<1x16x128xf32, #tpu.memory_space<vmem>>, vector<1x16x16xf32>
    %161 = vector.shape_cast %160 : vector<1x16x16xf32> to vector<16x16xf32>
    %162 = vector.shape_cast %159 : vector<16x16xf32> to vector<1x16x16xf32>
    tpu.vector_store %arg12[%c0_56, %c0_57, %c80], %162 {strides = array<i32>} : memref<1x16x128xf32, #tpu.memory_space<vmem>>, vector<1x16x16xf32>,
    %163 = arith.truncf %159 : vector<16x16xf32> to vector<16x16xbf16>
    %164 = arith.truncf %144 : vector<16x64xf32> to vector<16x64xbf16>
    %cst_58 = arith.constant dense<0.000000e+00> : vector<16x64xf32>
    %165 = tpu.matmul %163, %164, %cst_58 {dimension_numbers = #tpu.dot_dimension_numbers<[1], [0], [0], [1], [0, 0, 1, 1], [], []>} : vector<16x16xbf16>, vector<16x64xbf16>, vector<16x64xf32> -> vector<16x64xf32>
    %166 = arith.truncf %165 : vector<16x64xf32> to vector<16x64xbf16>
    %c16_59 = arith.constant 16 : index
    %c64_60 = arith.constant 64 : index
    %167 = vector.load %arg14[%c16_59, %c64_60] : memref<32x256xbf16, #tpu.memory_space<vmem>>, vector<16x64xbf16>
    tpu.vector_store %arg14[%c16_59, %c64_60], %166 {strides = array<i32>} : memref<32x256xbf16, #tpu.memory_space<vmem>>, vector<16x64xbf16>,
    %168 = vector.extract_strided_slice %11 {offsets = [16, 128], sizes = [16, 64], strides = [1, 1]} : vector<32x768xf32> to vector<16x64xf32>
    %169 = vector.extract_strided_slice %11 {offsets = [16, 384], sizes = [16, 64], strides = [1, 1]} : vector<32x768xf32> to vector<16x64xf32>
    %170 = vector.extract_strided_slice %11 {offsets = [16, 640], sizes = [16, 64], strides = [1, 1]} : vector<32x768xf32> to vector<16x64xf32>
    %171 = arith.truncf %168 : vector<16x64xf32> to vector<16x64xbf16>
    %172 = arith.truncf %169 : vector<16x64xf32> to vector<16x64xbf16>
    "tpu.trace_start"() <{level = 10 : i32, message = "qd,kd->qk"}> : () -> ()
    %cst_61 = arith.constant dense<0.000000e+00> : vector<16x16xf32>
    %173 = tpu.matmul %171, %172, %cst_61 {dimension_numbers = #tpu.dot_dimension_numbers<[1], [1], [0], [0], [0, 0, 1, 0], [], []>} : vector<16x64xbf16>, vector<16x64xbf16>, vector<16x16xf32> -> vector<16x16xf32>
    "tpu.trace_stop"() : () -> ()
    %cst_62 = arith.constant 1.250000e-01 : f32
    %174 = vector.broadcast %cst_62 : f32 to vector<16x16xf32>
    %175 = arith.mulf %173, %174 : vector<16x16xf32>
    %cst_63 = arith.constant dense<0xFF800000> : vector<16xf32>
    %176 = vector.multi_reduction <maximumf>, %175, %cst_63 [1] : vector<16x16xf32> to vector<16xf32>
    %177 = vector.shape_cast %176 : vector<16xf32> to vector<16x1xf32>
    %178 = vector.broadcast %177 : vector<16x1xf32> to vector<16x16xf32>
    %179 = arith.subf %175, %178 : vector<16x16xf32>
    %180 = math.exp %179 : vector<16x16xf32>
    %cst_64 = arith.constant dense<0.000000e+00> : vector<16xf32>
    %181 = vector.multi_reduction <add>, %180, %cst_64 [1] : vector<16x16xf32> to vector<16xf32>
    %182 = vector.shape_cast %181 : vector<16xf32> to vector<16x1xf32>
    %183 = tpu.reciprocal %182 {approx = true} : vector<16x1xf32> -> vector<16x1xf32>
    %184 = vector.broadcast %183 : vector<16x1xf32> to vector<16x16xf32>
    %185 = arith.mulf %180, %184 : vector<16x16xf32>
    %c0_65 = arith.constant 0 : index
    %c0_66 = arith.constant 0 : index
    %c96 = arith.constant 96 : index
    %186 = vector.load %arg12[%c0_65, %c0_66, %c96] : memref<1x16x128xf32, #tpu.memory_space<vmem>>, vector<1x16x16xf32>
    %187 = vector.shape_cast %186 : vector<1x16x16xf32> to vector<16x16xf32>
    %188 = vector.shape_cast %185 : vector<16x16xf32> to vector<1x16x16xf32>
    tpu.vector_store %arg12[%c0_65, %c0_66, %c96], %188 {strides = array<i32>} : memref<1x16x128xf32, #tpu.memory_space<vmem>>, vector<1x16x16xf32>,
    %189 = arith.truncf %185 : vector<16x16xf32> to vector<16x16xbf16>
    %190 = arith.truncf %170 : vector<16x64xf32> to vector<16x64xbf16>
    %cst_67 = arith.constant dense<0.000000e+00> : vector<16x64xf32>
    %191 = tpu.matmul %189, %190, %cst_67 {dimension_numbers = #tpu.dot_dimension_numbers<[1], [0], [0], [1], [0, 0, 1, 1], [], []>} : vector<16x16xbf16>, vector<16x64xbf16>, vector<16x64xf32> -> vector<16x64xf32>
    %192 = arith.truncf %191 : vector<16x64xf32> to vector<16x64xbf16>
    %c16_68 = arith.constant 16 : index
    %c128_69 = arith.constant 128 : index
    %193 = vector.load %arg14[%c16_68, %c128_69] : memref<32x256xbf16, #tpu.memory_space<vmem>>, vector<16x64xbf16>
    tpu.vector_store %arg14[%c16_68, %c128_69], %192 {strides = array<i32>} : memref<32x256xbf16, #tpu.memory_space<vmem>>, vector<16x64xbf16>,
    %194 = vector.extract_strided_slice %11 {offsets = [16, 192], sizes = [16, 64], strides = [1, 1]} : vector<32x768xf32> to vector<16x64xf32>
    %195 = vector.extract_strided_slice %11 {offsets = [16, 448], sizes = [16, 64], strides = [1, 1]} : vector<32x768xf32> to vector<16x64xf32>
    %196 = vector.extract_strided_slice %11 {offsets = [16, 704], sizes = [16, 64], strides = [1, 1]} : vector<32x768xf32> to vector<16x64xf32>
    %197 = arith.truncf %194 : vector<16x64xf32> to vector<16x64xbf16>
    %198 = arith.truncf %195 : vector<16x64xf32> to vector<16x64xbf16>
    "tpu.trace_start"() <{level = 10 : i32, message = "qd,kd->qk"}> : () -> ()
    %cst_70 = arith.constant dense<0.000000e+00> : vector<16x16xf32>
    %199 = tpu.matmul %197, %198, %cst_70 {dimension_numbers = #tpu.dot_dimension_numbers<[1], [1], [0], [0], [0, 0, 1, 0], [], []>} : vector<16x64xbf16>, vector<16x64xbf16>, vector<16x16xf32> -> vector<16x16xf32>
    "tpu.trace_stop"() : () -> ()
    %cst_71 = arith.constant 1.250000e-01 : f32
    %200 = vector.broadcast %cst_71 : f32 to vector<16x16xf32>
    %201 = arith.mulf %199, %200 : vector<16x16xf32>
    %cst_72 = arith.constant dense<0xFF800000> : vector<16xf32>
    %202 = vector.multi_reduction <maximumf>, %201, %cst_72 [1] : vector<16x16xf32> to vector<16xf32>
    %203 = vector.shape_cast %202 : vector<16xf32> to vector<16x1xf32>
    %204 = vector.broadcast %203 : vector<16x1xf32> to vector<16x16xf32>
    %205 = arith.subf %201, %204 : vector<16x16xf32>
    %206 = math.exp %205 : vector<16x16xf32>
    %cst_73 = arith.constant dense<0.000000e+00> : vector<16xf32>
    %207 = vector.multi_reduction <add>, %206, %cst_73 [1] : vector<16x16xf32> to vector<16xf32>
    %208 = vector.shape_cast %207 : vector<16xf32> to vector<16x1xf32>
    %209 = tpu.reciprocal %208 {approx = true} : vector<16x1xf32> -> vector<16x1xf32>
    %210 = vector.broadcast %209 : vector<16x1xf32> to vector<16x16xf32>
    %211 = arith.mulf %206, %210 : vector<16x16xf32>
    %c0_74 = arith.constant 0 : index
    %c0_75 = arith.constant 0 : index
    %c112 = arith.constant 112 : index
    %212 = vector.load %arg12[%c0_74, %c0_75, %c112] : memref<1x16x128xf32, #tpu.memory_space<vmem>>, vector<1x16x16xf32>
    %213 = vector.shape_cast %212 : vector<1x16x16xf32> to vector<16x16xf32>
    %214 = vector.shape_cast %211 : vector<16x16xf32> to vector<1x16x16xf32>
    tpu.vector_store %arg12[%c0_74, %c0_75, %c112], %214 {strides = array<i32>} : memref<1x16x128xf32, #tpu.memory_space<vmem>>, vector<1x16x16xf32>,
    %215 = arith.truncf %211 : vector<16x16xf32> to vector<16x16xbf16>
    %216 = arith.truncf %196 : vector<16x64xf32> to vector<16x64xbf16>
    %cst_76 = arith.constant dense<0.000000e+00> : vector<16x64xf32>
    %217 = tpu.matmul %215, %216, %cst_76 {dimension_numbers = #tpu.dot_dimension_numbers<[1], [0], [0], [1], [0, 0, 1, 1], [], []>} : vector<16x16xbf16>, vector<16x64xbf16>, vector<16x64xf32> -> vector<16x64xf32>
    %218 = arith.truncf %217 : vector<16x64xf32> to vector<16x64xbf16>
    %c16_77 = arith.constant 16 : index
    %c192_78 = arith.constant 192 : index
    %219 = vector.load %arg14[%c16_77, %c192_78] : memref<32x256xbf16, #tpu.memory_space<vmem>>, vector<16x64xbf16>
    tpu.vector_store %arg14[%c16_77, %c192_78], %218 {strides = array<i32>} : memref<32x256xbf16, #tpu.memory_space<vmem>>, vector<16x64xbf16>,
    %c0_79 = arith.constant 0 : index
    %c0_80 = arith.constant 0 : index
    %220 = vector.load %arg14[%c0_79, %c0_80] : memref<32x256xbf16, #tpu.memory_space<vmem>>, vector<32x256xbf16>
    %c0_81 = arith.constant 0 : index
    %c0_82 = arith.constant 0 : index
    %c0_83 = arith.constant 0 : index
    %221 = vector.load %arg5[%c0_81, %c0_82, %c0_83] : memref<1x256x128xbf16, #tpu.memory_space<vmem>>, vector<1x256x128xbf16>
    %222 = vector.shape_cast %221 : vector<1x256x128xbf16> to vector<256x128xbf16>
    %cst_84 = arith.constant dense<0.000000e+00> : vector<32x128xf32>
    %223 = tpu.matmul %220, %222, %cst_84 {dimension_numbers = #tpu.dot_dimension_numbers<[1], [0], [0], [1], [0, 0, 1, 1], [], []>} : vector<32x256xbf16>, vector<256x128xbf16>, vector<32x128xf32> -> vector<32x128xf32>
    %c0_85 = arith.constant 0 : index
    %c0_86 = arith.constant 0 : index
    %c0_87 = arith.constant 0 : index
    %224 = vector.load %arg6[%c0_85, %c0_86, %c0_87] : memref<1x1x128xf32, #tpu.memory_space<vmem>>, vector<1x1x128xf32>
    %225 = vector.shape_cast %224 : vector<1x1x128xf32> to vector<1x128xf32>
    %226 = vector.broadcast %225 : vector<1x128xf32> to vector<32x128xf32>
    %227 = arith.addf %223, %226 : vector<32x128xf32>
    %228 = arith.addf %227, %3 : vector<32x128xf32>
    %cst_88 = arith.constant dense<0.000000e+00> : vector<32xf32>
    %229 = vector.multi_reduction <add>, %228, %cst_88 [1] : vector<32x128xf32> to vector<32xf32>
    %230 = vector.shape_cast %229 : vector<32xf32> to vector<32x1xf32>
    %cst_89 = arith.constant 1.280000e+02 : f32
    %231 = vector.broadcast %cst_89 : f32 to vector<32x1xf32>
    %232 = arith.divf %230, %231 : vector<32x1xf32>
    %233 = vector.broadcast %232 : vector<32x1xf32> to vector<32x128xf32>
    %234 = arith.subf %228, %233 : vector<32x128xf32>
    %235 = arith.mulf %234, %234 : vector<32x128xf32>
    %cst_90 = arith.constant dense<0.000000e+00> : vector<32xf32>
    %236 = vector.multi_reduction <add>, %235, %cst_90 [1] : vector<32x128xf32> to vector<32xf32>
    %237 = vector.shape_cast %236 : vector<32xf32> to vector<32x1xf32>
    %cst_91 = arith.constant 1.280000e+02 : f32
    %238 = vector.broadcast %cst_91 : f32 to vector<32x1xf32>
    %239 = arith.divf %237, %238 : vector<32x1xf32>
    %cst_92 = arith.constant 9.99999974E-6 : f32
    %240 = vector.broadcast %cst_92 : f32 to vector<32x1xf32>
    %241 = arith.addf %239, %240 : vector<32x1xf32>
    %242 = math.rsqrt %241 : vector<32x1xf32>
    %243 = vector.broadcast %242 : vector<32x1xf32> to vector<32x128xf32>
    %244 = arith.mulf %234, %243 : vector<32x128xf32>
    %245 = arith.truncf %244 : vector<32x128xf32> to vector<32x128xbf16>
    %c0_93 = arith.constant 0 : index
    %c0_94 = arith.constant 0 : index
    %c0_95 = arith.constant 0 : index
    %246 = vector.load %arg7[%c0_93, %c0_94, %c0_95] : memref<1x128x256xbf16, #tpu.memory_space<vmem>>, vector<1x128x256xbf16>
    %247 = vector.shape_cast %246 : vector<1x128x256xbf16> to vector<128x256xbf16>
    %cst_96 = arith.constant dense<0.000000e+00> : vector<32x256xf32>
    %248 = tpu.matmul %245, %247, %cst_96 {dimension_numbers = #tpu.dot_dimension_numbers<[1], [0], [0], [1], [0, 0, 1, 1], [], []>} : vector<32x128xbf16>, vector<128x256xbf16>, vector<32x256xf32> -> vector<32x256xf32>
    %c0_97 = arith.constant 0 : index
    %c0_98 = arith.constant 0 : index
    %c0_99 = arith.constant 0 : index
    %249 = vector.load %arg8[%c0_97, %c0_98, %c0_99] : memref<1x1x256xf32, #tpu.memory_space<vmem>>, vector<1x1x256xf32>
    %250 = vector.shape_cast %249 : vector<1x1x256xf32> to vector<1x256xf32>
    %251 = vector.broadcast %250 : vector<1x256xf32> to vector<32x256xf32>
    %252 = arith.addf %248, %251 : vector<32x256xf32>
    %cst_100 = arith.constant 0.000000e+00 : f32
    %253 = vector.broadcast %cst_100 : f32 to vector<32x256xf32>
    %254 = arith.maximumf %252, %253 : vector<32x256xf32>
    %255 = arith.truncf %254 : vector<32x256xf32> to vector<32x256xbf16>
    %c0_101 = arith.constant 0 : index
    %c0_102 = arith.constant 0 : index
    %c0_103 = arith.constant 0 : index
    %256 = vector.load %arg9[%c0_101, %c0_102, %c0_103] : memref<1x256x128xbf16, #tpu.memory_space<vmem>>, vector<1x256x128xbf16>
    %257 = vector.shape_cast %256 : vector<1x256x128xbf16> to vector<256x128xbf16>
    %cst_104 = arith.constant dense<0.000000e+00> : vector<32x128xf32>
    %258 = tpu.matmul %255, %257, %cst_104 {dimension_numbers = #tpu.dot_dimension_numbers<[1], [0], [0], [1], [0, 0, 1, 1], [], []>} : vector<32x256xbf16>, vector<256x128xbf16>, vector<32x128xf32> -> vector<32x128xf32>
    %c0_105 = arith.constant 0 : index
    %c0_106 = arith.constant 0 : index
    %c0_107 = arith.constant 0 : index
    %259 = vector.load %arg10[%c0_105, %c0_106, %c0_107] : memref<1x1x128xf32, #tpu.memory_space<vmem>>, vector<1x1x128xf32>
    %260 = vector.shape_cast %259 : vector<1x1x128xf32> to vector<1x128xf32>
    %261 = vector.broadcast %260 : vector<1x128xf32> to vector<32x128xf32>
    %262 = arith.addf %258, %261 : vector<32x128xf32>
    %263 = arith.addf %262, %244 : vector<32x128xf32>
    %cst_108 = arith.constant dense<0.000000e+00> : vector<32xf32>
    %264 = vector.multi_reduction <add>, %263, %cst_108 [1] : vector<32x128xf32> to vector<32xf32>
    %265 = vector.shape_cast %264 : vector<32xf32> to vector<32x1xf32>
    %cst_109 = arith.constant 1.280000e+02 : f32
    %266 = vector.broadcast %cst_109 : f32 to vector<32x1xf32>
    %267 = arith.divf %265, %266 : vector<32x1xf32>
    %268 = vector.broadcast %267 : vector<32x1xf32> to vector<32x128xf32>
    %269 = arith.subf %263, %268 : vector<32x128xf32>
    %270 = arith.mulf %269, %269 : vector<32x128xf32>
    %cst_110 = arith.constant dense<0.000000e+00> : vector<32xf32>
    %271 = vector.multi_reduction <add>, %270, %cst_110 [1] : vector<32x128xf32> to vector<32xf32>
    %272 = vector.shape_cast %271 : vector<32xf32> to vector<32x1xf32>
    %cst_111 = arith.constant 1.280000e+02 : f32
    %273 = vector.broadcast %cst_111 : f32 to vector<32x1xf32>
    %274 = arith.divf %272, %273 : vector<32x1xf32>
    %cst_112 = arith.constant 9.99999974E-6 : f32
    %275 = vector.broadcast %cst_112 : f32 to vector<32x1xf32>
    %276 = arith.addf %274, %275 : vector<32x1xf32>
    %277 = math.rsqrt %276 : vector<32x1xf32>
    %278 = vector.broadcast %277 : vector<32x1xf32> to vector<32x128xf32>
    %279 = arith.mulf %269, %278 : vector<32x128xf32>
    %c0_113 = arith.constant 0 : index
    %c0_114 = arith.constant 0 : index
    %280 = vector.load %arg13[%c0_113, %c0_114] : memref<32x128xf32, #tpu.memory_space<vmem>>, vector<32x128xf32>
    tpu.vector_store %arg13[%c0_113, %c0_114], %279 {strides = array<i32>} : memref<32x128xf32, #tpu.memory_space<vmem>>, vector<32x128xf32>,
    %c1_i32 = arith.constant 1 : i32
    %281 = arith.cmpi eq, %arg0, %c1_i32 : i32
    %282 = arith.extui %281 : i1 to i32
    %c0_i32_115 = arith.constant 0 : i32
    %283 = arith.cmpi ne, %282, %c0_i32_115 : i32
    scf.if %283 {
      %c0_116 = arith.constant 0 : index
      %c0_117 = arith.constant 0 : index
      %284 = vector.load %arg11[%c0_116, %c0_117] : memref<32x128xf32, #tpu.memory_space<vmem>>, vector<32x128xf32>
      tpu.vector_store %arg11[%c0_116, %c0_117], %279 {strides = array<i32>} : memref<32x128xf32, #tpu.memory_space<vmem>>, vector<32x128xf32>,
    } else {
    }
    return
  }
  func.func @transform_0(%arg0: i32) -> (i32, i32) {
    %c0_i32 = arith.constant 0 : i32
    %c0_i32_0 = arith.constant 0 : i32
    %c0_i32_1 = arith.constant 0 : i32
    return %c0_i32, %c0_i32_0 : i32, i32
  }
  func.func @transform_1(%arg0: i32) -> (i32, i32) {
    %c0_i32 = arith.constant 0 : i32
    %c0_i32_0 = arith.constant 0 : i32
    %c0_i32_1 = arith.constant 0 : i32
    return %c0_i32, %c0_i32_0 : i32, i32
  }
  func.func @transform_2(%arg0: i32) -> (i32, i32, i32) {
    %c0_i32 = arith.constant 0 : i32
    %c0_i32_0 = arith.constant 0 : i32
    %c0_i32_1 = arith.constant 0 : i32
    return %arg0, %c0_i32, %c0_i32_0 : i32, i32, i32
  }
  func.func @transform_3(%arg0: i32) -> (i32, i32, i32) {
    %c0_i32 = arith.constant 0 : i32
    %c0_i32_0 = arith.constant 0 : i32
    %c0_i32_1 = arith.constant 0 : i32
    return %arg0, %c0_i32, %c0_i32_0 : i32, i32, i32
  }
  func.func @transform_4(%arg0: i32) -> (i32, i32, i32) {
    %c0_i32 = arith.constant 0 : i32
    %c0_i32_0 = arith.constant 0 : i32
    %c0_i32_1 = arith.constant 0 : i32
    return %arg0, %c0_i32, %c0_i32_0 : i32, i32, i32
  }
  func.func @transform_5(%arg0: i32) -> (i32, i32, i32) {
    %c0_i32 = arith.constant 0 : i32
    %c0_i32_0 = arith.constant 0 : i32
    %c0_i32_1 = arith.constant 0 : i32
    return %arg0, %c0_i32, %c0_i32_0 : i32, i32, i32
  }
  func.func @transform_6(%arg0: i32) -> (i32, i32, i32) {
    %c0_i32 = arith.constant 0 : i32
    %c0_i32_0 = arith.constant 0 : i32
    %c0_i32_1 = arith.constant 0 : i32
    return %arg0, %c0_i32, %c0_i32_0 : i32, i32, i32
  }
  func.func @transform_7(%arg0: i32) -> (i32, i32, i32) {
    %c0_i32 = arith.constant 0 : i32
    %c0_i32_0 = arith.constant 0 : i32
    %c0_i32_1 = arith.constant 0 : i32
    return %arg0, %c0_i32, %c0_i32_0 : i32, i32, i32
  }
  func.func @transform_8(%arg0: i32) -> (i32, i32, i32) {
    %c0_i32 = arith.constant 0 : i32
    %c0_i32_0 = arith.constant 0 : i32
    %c0_i32_1 = arith.constant 0 : i32
    return %arg0, %c0_i32, %c0_i32_0 : i32, i32, i32
  }
  func.func @transform_9(%arg0: i32) -> (i32, i32, i32) {
    %c0_i32 = arith.constant 0 : i32
    %c0_i32_0 = arith.constant 0 : i32
    %c0_i32_1 = arith.constant 0 : i32
    return %arg0, %c0_i32, %c0_i32_0 : i32, i32, i32
  }
  func.func @transform_10(%arg0: i32) -> (i32, i32) {
    %c0_i32 = arith.constant 0 : i32
    %c0_i32_0 = arith.constant 0 : i32
    %c0_i32_1 = arith.constant 0 : i32
    return %c0_i32, %c0_i32_0 : i32, i32
  }
  func.func @transform_11(%arg0: i32) -> (i32, i32, i32) {
    %c0_i32 = arith.constant 0 : i32
    %c0_i32_0 = arith.constant 0 : i32
    %c0_i32_1 = arith.constant 0 : i32
    return %arg0, %c0_i32, %c0_i32_0 : i32, i32, i32
  }
}

</mosaic_0001>

<bundles_post_ra>
// kernel: encoder_forward.1
= control target key start
LH: loop header
LB: loop body
LE: loop exit
PB: predicated region body
PF: predicated region fallthrough
CT: control target
= control target key end

     0   :  { %s5064_s0 = inlined_call_operand.hbm [shape: f32[32,128], index: 0, kind: input, shape index: {}]   ;;  %s5065_s1 = inlined_call_operand.vmem [shape: f32[16,128], index: 1, kind: input, shape index: {}]   ;;  %s5066_s2 = inlined_call_operand.hbm [shape: bf16[2,128,768], index: 2, kind: input, shape index: {}]   ;;  %s5067_s3 = inlined_call_operand.vmem [shape: f32[2,1,768], index: 3, kind: input, shape index: {}]   ;;  %s5068_s4 = inlined_call_operand.hbm [shape: bf16[2,256,128], index: 4, kind: input, shape index: {}]   ;;  %s5069_s5 = inlined_call_operand.vmem [shape: f32[2,1,128], index: 5, kind: input, shape index: {}]   ;;  %s5070_s6 = inlined_call_operand.hbm [shape: bf16[2,128,256], index: 6, kind: input, shape index: {}]   ;;  %s5071_s7 = inlined_call_operand.hbm [shape: f32[2,1,256], index: 7, kind: input, shape index: {}]   ;;  %s5072_s8 = inlined_call_operand.hbm [shape: bf16[2,256,128], index: 8, kind: input, shape index: {}]   ;;  %s5073_s9 = inlined_call_operand.hbm [shape: f32[2,1,128], index: 9, kind: input, shape index: {}]   ;;  %s5074_s10 = inlined_call_operand.hbm [shape: f32[32,128], index: 10, kind: output, shape index: {0}]   ;;  %s5075_s11 = inlined_call_operand.vmem [shape: f32[2,16,128], index: 11, kind: output, shape index: {1}]  }
   0x1   :  { %5094 = sst [smem:[#allocation25_spill]] %s5066_s2 }
   0x2   :  { %5095 = sst [smem:[#allocation26_spill]] %s5068_s4 }
   0x3   :  { %5096 = sst [smem:[#allocation27_spill]] %s5070_s6 }
   0x4   :  { %5097 = sst [smem:[#allocation28_spill]] %s5072_s8 }
   0x5   :  { %5098 = sst [smem:[#allocation29_spill]] %s5074_s10 }
   0x6   :  { %17 = vsyncpa [#allocation5], 0 }
   0x7   :  { %18 = vsyncpa [#allocation8], 0 }
   0x8   :  { %20 = vsyncpa [#allocation8 + $0x1], 0 }
   0x9   :  { %21 = vsyncpa [#allocation11], 0 }
   0xa   :  { %23 = vsyncpa [#allocation11 + $0x1], 0 }
   0xb   :  { %24 = vsyncpa [#allocation14], 0 }
   0xc   :  { %26 = vsyncpa [#allocation14 + $0x1], 0 }
   0xd   :  { %27 = vsyncpa [#allocation6], 0  ;;  %s4159_s17 = smov 0   ;;  %s4161_s18 = smov 0  }
   0xe   :  { %s4163_s19 = smov 0   ;;  %s4165_s20 = smov 0  }
   0xf LB: > { %5099 = sst [smem:[#allocation22_spill]] %s4067_s19  ;;  %s4180_s21 = sadd.s32 1, %s4071_s20   ;;  %s4071_s20 = sphi %s4165_s20, %s5130_s20   ;;  %s4067_s19 = sphi %s4163_s19, %s5132_s19   ;;  %s4063_s18 = sphi %s4161_s18, %s5134_s18   ;;  %s4059_s17 = sphi %s4159_s17, %s5133_s17  }
  0x10   : > { %5100 = sst [smem:[#allocation23_spill]] %s4180_s21  ;;  %s82_s22 = sadd.s32 1, %s4067_s19 }
  0x11   : > { %s79_s23 = ssub.s32 %s4071_s20, %s4180_s21  ;;  %p89_p0 = scmp.ne.s32.totalorder %s4067_s19, %s4063_s18 }
  0x12   : > { %p80_p1 = scmp.eq.s32.totalorder %s79_s23, 0  ;;  %p90_p2 = scmp.eq.s32.totalorder %s4071_s20, 0 }
  0x13   : > { %p3519_p3 = scmp.lt.s32.totalorder %s4071_s20, 2  ;;  %s4193_s25 = sand.u32 1, %s4071_s20  }
  0x14   : > { %s4190_s24 = scalar_select %p80_p1, %s4067_s19, %s82_s22  }
  0x15   : > { %p91_p4 = por %p90_p2, %p89_p0  ;;  %s4196_s26 = sand.u32 1, %s4067_s19  }
  0x16   : > { %5101 = sst [smem:[#allocation24_spill]] %s4190_s24  ;;  %s3471_s27 = smul.u32 384, %s4196_s26 }
  0x17   : > { %p4199_p5 = pnand %p3519_p3, %p91_p4  ;;  %s3472_s29 = smul.u32 6144, %s4071_s20 }
  0x18   : > { %s5103_s2 = sld [smem:[#allocation25_spill]]  ;;  %s368_s14 = scalar_lea.vmem [#allocation7], %s3471_s27 }
  0x19   : > { %s5102_s28 = scalar_select %p4199_p5, 1, 0 }
  0x1a   : > { %s375_s15 = sshll.u32 %s368_s14, 4  ;;  %p4216_p7 = pneg %p4199_p5  ;;  %s4209_s15 = int_to_ptr.vmem [resolvable:$true] %s375_s15 }
  0x1c   : > { %s5104_s23 = scalar_select %p4216_p7, 1, 0 }
  0x1e   : > { %s4207_s13 = scalar_lea.hbm %s5103_s2, %s3472_s29  ;;  %s3792_s12 = scalar_lea.hbm %s5103_s2, 12288 }
  0x1f   : > { %s3787_s22 = scalar_lea.hbm %s4207_s13, 6144  ;;  %p3793_p10 = scmp.lt.u32.totalorder %s4207_s13, %s5103_s2 }
  0x20   : > { %p3788_p6 = scmp.ne.s32.totalorder %s4207_s13, %s3787_s22  ;;  %p3794_p11 = scmp.lt.u32.totalorder %s3792_s12, %s3787_s22 }
  0x21   : > { %p3796_p13 = scmp.lt.u32.totalorder %s3787_s22, %s4207_s13 }
  0x22   : > { %p3790_p8 = pnand %p4216_p7, %p3788_p6  ;;  %p3795_p12 = por %p3794_p11, %p3793_p10 }
  0x24   : > { %p3791_p9 = pneg %p3790_p8  ;;  %p3797_p0 = por %p3796_p13, %p3795_p12 }
  0x26   : > { %p3798_p1 = pnand %p3797_p0, %p3791_p9 }
  0x28   : > { %3801 = shalt.err (!%p3798_p1)
}
  0x29   : > { %s3802_s16 = scalar_lea.vmem %s4209_s15, 6144  ;;  %s4073_s29 = smov [#allocation7]  }
  0x2a   : > { %p3803_p2 = scmp.ne.s32.totalorder %s4209_s15, %s3802_s16  ;;  %s3807_s30 = sshll.u32 %s4073_s29, 4  ;;  %s3808_s30 = int_to_ptr.vmem [resolvable:$false] %s3807_s30 }
  0x2b   : > { %s3809_s27 = scalar_lea.vmem %s3808_s30, 12288  ;;  %p3810_p6 = scmp.lt.s32.totalorder %s4209_s15, %s3808_s30 }
  0x2c   : > { %p3805_p3 = pnand %p3803_p2, %p4216_p7  ;;  %p3811_p8 = scmp.lt.s32.totalorder %s3809_s27, %s3802_s16 }
  0x2e   : > { %p3806_p4 = pneg %p3805_p3  ;;  %p3812_p10 = por %p3811_p8, %p3810_p6 }
  0x30   : > { %p3813_p11 = pnand %p3812_p10, %p3806_p4 }
  0x32   : > { %3816 = shalt.err (!%p3813_p11)
}
  0x33   : > { %s4074_s22 = smov 384   ;;  %s4075_s12 = smov 24  }
  0x34   : > { %s5105_s14 = scalar_lea.sflag [#allocation8], %s4193_s25  ;;  %s4242_s29 = sshll.u32 %s4196_s26, 7 }
  0x35   : > { %3502 = dma.hbm_to_vmem [thread:$0]  (!%p4199_p5), %s4207_s13, 6144, %s4209_s15, %s5105_s14, %s4074_s22, %s4074_s22, %s4075_s12  }
  0x36   : > { %s4245_s16 = sshll.u32 %s4071_s20, 11  ;;  %s5106_s6 = sld [smem:[#allocation27_spill]] }
  0x37   : > { %s423_s24 = scalar_lea.vmem [#allocation10], %s4242_s29  ;;  %s5079_s13 = scalar_lea.sflag [#allocation11], %s4193_s25 }
  0x38   : > { %s430_s19 = sshll.u32 %s423_s24, 4  ;;  %s4254_s19 = int_to_ptr.vmem [resolvable:$true] %s430_s19 }
  0x3c   : > { %s4251_s2 = scalar_lea.hbm %s5106_s6, %s4245_s16  ;;  %s3822_s14 = scalar_lea.hbm %s5106_s6, 4096 }
  0x3d   : > { %s3817_s15 = scalar_lea.hbm %s4251_s2, 2048  ;;  %p3823_p0 = scmp.lt.u32.totalorder %s4251_s2, %s5106_s6 }
  0x3e   : > { %p3818_p9 = scmp.ne.s32.totalorder %s4251_s2, %s3817_s15  ;;  %p3824_p1 = scmp.lt.u32.totalorder %s3822_s14, %s3817_s15 }
  0x3f   : > { %p3826_p3 = scmp.lt.u32.totalorder %s3817_s15, %s4251_s2 }
  0x40   : > { %p3820_p12 = pnand %p3818_p9, %p4216_p7  ;;  %p3825_p2 = por %p3824_p1, %p3823_p0 }
  0x42   : > { %p3821_p13 = pneg %p3820_p12  ;;  %p3827_p4 = por %p3826_p3, %p3825_p2 }
  0x44   : > { %p3828_p6 = pnand %p3827_p4, %p3821_p13 }
  0x46   : > { %3831 = shalt.err (!%p3828_p6)
}
  0x47   : > { %s3832_s24 = scalar_lea.vmem %s4254_s19, 2048  ;;  %s4076_s22 = smov [#allocation10]  }
  0x48   : > { %p3833_p8 = scmp.ne.s32.totalorder %s4254_s19, %s3832_s24  ;;  %s3837_s12 = sshll.u32 %s4076_s22, 4  ;;  %s3838_s12 = int_to_ptr.vmem [resolvable:$false] %s3837_s12 }
  0x49   : > { %s3839_s30 = scalar_lea.vmem %s3838_s12, 4096  ;;  %p3840_p9 = scmp.lt.s32.totalorder %s4254_s19, %s3838_s12 }
  0x4a   : > { %p3835_p10 = pnand %p3833_p8, %p4216_p7  ;;  %p3841_p12 = scmp.lt.s32.totalorder %s3839_s30, %s3832_s24 }
  0x4c   : > { %p3836_p11 = pneg %p3835_p10  ;;  %p3842_p0 = por %p3841_p12, %p3840_p9 }
  0x4e   : > { %p3843_p1 = pnand %p3842_p0, %p3836_p11 }
  0x50   : > { %3846 = shalt.err (!%p3843_p1)
}
  0x51   : > { %s5081_s15 = smov 128   ;;  %s5082_s14 = smov 8  }
  0x52   : > { %3508 = dma.hbm_to_vmem [thread:$0]  (!%p4199_p5), %s4251_s2, 2048, %s4254_s19, %s5079_s13, %s5081_s15, %s5081_s15, %s5082_s14  }
  0x53   : > { %s5107_s8 = sld [smem:[#allocation28_spill]]  ;;  %s463_s12 = scalar_lea.vmem [#allocation13], %s4242_s29 }
  0x54   : > { %s470_s30 = sshll.u32 %s463_s12, 4  ;;  %s5080_s6 = scalar_lea.sflag [#allocation14], %s4193_s25  ;;  %s4290_s30 = int_to_ptr.vmem [resolvable:$true] %s470_s30 }
  0x59   : > { %s4287_s22 = scalar_lea.hbm %s5107_s8, %s4245_s16  ;;  %s3852_s27 = scalar_lea.hbm %s5107_s8, 4096 }
  0x5a   : > { %s3847_s21 = scalar_lea.hbm %s4287_s22, 2048  ;;  %p3853_p4 = scmp.lt.u32.totalorder %s4287_s22, %s5107_s8 }
  0x5b   : > { %p3848_p13 = scmp.ne.s32.totalorder %s4287_s22, %s3847_s21  ;;  %p3854_p6 = scmp.lt.u32.totalorder %s3852_s27, %s3847_s21 }
  0x5c   : > { %p3856_p10 = scmp.lt.u32.totalorder %s3847_s21, %s4287_s22 }
  0x5d   : > { %p3850_p2 = pnand %p3848_p13, %p4216_p7  ;;  %p3855_p8 = por %p3854_p6, %p3853_p4 }
  0x5f   : > { %p3851_p3 = pneg %p3850_p2  ;;  %p3857_p11 = por %p3856_p10, %p3855_p8 }
  0x61   : > { %p3858_p9 = pnand %p3857_p11, %p3851_p3 }
  0x63   : > { %3861 = shalt.err (!%p3858_p9)
}
  0x64   : > { %s3862_s12 = scalar_lea.vmem %s4290_s30, 2048  ;;  %s4079_s2 = smov [#allocation13]  }
  0x65   : > { %p3863_p12 = scmp.ne.s32.totalorder %s4290_s30, %s3862_s12  ;;  %s3867_s19 = sshll.u32 %s4079_s2, 4  ;;  %s3868_s19 = int_to_ptr.vmem [resolvable:$false] %s3867_s19 }
  0x66   : > { %s3869_s13 = scalar_lea.vmem %s3868_s19, 4096  ;;  %p3870_p13 = scmp.lt.s32.totalorder %s4290_s30, %s3868_s19 }
  0x67   : > { %p3865_p0 = pnand %p3863_p12, %p4216_p7  ;;  %p3871_p2 = scmp.lt.s32.totalorder %s3869_s13, %s3862_s12 }
  0x69   : > { %p3866_p1 = pneg %p3865_p0  ;;  %p3872_p4 = por %p3871_p2, %p3870_p13 }
  0x6b   : > { %p3873_p6 = pnand %p3872_p4, %p3866_p1 }
  0x6d   : > { %3876 = shalt.err (!%p3873_p6)
}
  0x6e   : > { %s5083_s21 = smov 64   ;;  %s5084_s27 = smov 4  }
  0x6f   : > { %3514 = dma.hbm_to_vmem [thread:$0]  (!%p4199_p5), %s4287_s22, 2048, %s4290_s30, %s5080_s6, %s5083_s21, %s5083_s21, %s5084_s27  }
  0x70   : > { %s4320_s24 = sadd.s32 4294967295, %s4071_s20   ;;  %p95_p3 = scmp.ne.s32.totalorder %s4063_s18, %s4059_s17 }
  0x71   : > { %p5085_p8 = scmp.eq.s32.totalorder %s4320_s24, 0  ;;  %p3121_p10 = scmp.ge.s32.totalorder %s4071_s20, 1 }
  0x72   : > { %p335_p11 = scmp.lt.s32.totalorder %s4071_s20, 3  ;;  %s4082_s30 = smov [#allocation4]  }
  0x73   : > { %p4330_p12 = por %p5085_p8, %p95_p3  ;;  %s347_s2 = sshll.u32 %s4082_s30, 4  ;;  %s4338_s2 = int_to_ptr.vmem [resolvable:$true] %s347_s2 }
  0x74   : > { %p4334_p0 = pnand %p3121_p10, %p335_p11  ;;  %s5110_s4 = sld [smem:[#allocation26_spill]] }
  0x75   : > { %s5108_s12 = scalar_select %p4330_p12, 1, 0 }
  0x76   : > { %s5109_s22 = scalar_select %p4334_p0, 1, 0 }
  0x77   : > { %p3495_p1 = pneg %p4334_p0  ;;  %s396_s6 = scalar_lea.vmem [#allocation9], %s4242_s29 }
  0x78   : > { %s403_s15 = sshll.u32 %s396_s6, 4  ;;  %s4356_s15 = int_to_ptr.vmem [resolvable:$true] %s403_s15 }
  0x79   : > { %p4352_p13 = pnand %p3495_p1, %p5085_p8 }
  0x7a   : > { %s4346_s13 = scalar_lea.hbm %s5110_s4, %s4245_s16  ;;  %s3882_s19 = scalar_lea.hbm %s5110_s4, 4096 }
  0x7b   : > { %s5111_s21 = scalar_select %p4352_p13, 1, 0 }
  0x7c   : > { %s3877_s30 = scalar_lea.hbm %s4346_s13, 2048  ;;  %p3883_p3 = scmp.lt.u32.totalorder %s4346_s13, %s5110_s4 }
  0x7d   : > { %p3878_p2 = scmp.ne.s32.totalorder %s4346_s13, %s3877_s30  ;;  %p3884_p10 = scmp.lt.u32.totalorder %s3882_s19, %s3877_s30 }
  0x7e   : > { %p3886_p1 = scmp.lt.u32.totalorder %s3877_s30, %s4346_s13 }
  0x7f   : > { %p3880_p4 = pnand %p3878_p2, %p4216_p7  ;;  %p3885_p11 = por %p3884_p10, %p3883_p3 }
  0x81   : > { %p3881_p6 = pneg %p3880_p4  ;;  %p3887_p9 = por %p3886_p1, %p3885_p11 }
  0x83   : > { %p3888_p8 = pnand %p3887_p9, %p3881_p6 }
  0x85   : > { %3891 = shalt.err (!%p3888_p8)
}
  0x86   : > { %s3892_s6 = scalar_lea.vmem %s4356_s15, 2048  ;;  %s4083_s16 = smov [#allocation9]  }
  0x87   : > { %p3893_p2 = scmp.ne.s32.totalorder %s4356_s15, %s3892_s6  ;;  %s3897_s17 = sshll.u32 %s4083_s16, 4  ;;  %s3898_s17 = int_to_ptr.vmem [resolvable:$false] %s3897_s17 }
  0x88   : > { %s3899_s27 = scalar_lea.vmem %s3898_s17, 4096  ;;  %p3900_p0 = scmp.lt.s32.totalorder %s4356_s15, %s3898_s17 }
  0x89   : > { %p3895_p4 = pnand %p3893_p2, %p4216_p7  ;;  %p3901_p13 = scmp.lt.s32.totalorder %s3899_s27, %s3892_s6 }
  0x8b   : > { %p3896_p12 = pneg %p3895_p4  ;;  %p3902_p3 = por %p3901_p13, %p3900_p0 }
  0x8d   : > { %p3903_p10 = pnand %p3902_p3, %p3896_p12 }
  0x8f   : > { %3906 = shalt.err (!%p3903_p10)
}
  0x90   : > { %s5112_s30 = smov 4   ;;  %s5113_s19 = smov 64  }
  0x91   : > { %s5114_s29 = scalar_lea.sflag [#allocation8], %s4193_s25  ;;  %s3907_s4 = scalar_lea.hbm %s5064_s0, 512 }
  0x92   : > { %3505 = dma.hbm_to_vmem [thread:$0]  (!%p4199_p5), %s4346_s13, 2048, %s4356_s15, %s5114_s29, %s5113_s19, %s5113_s19, %s5112_s30  }
  0x93   : > { %p3908_p8 = scmp.ne.s32.totalorder %s5064_s0, %s3907_s4  ;;  %p5115_p9 = scmp.ne.s32.totalorder %s5111_s21, 0 }
  0x94   : > { %p3914_p6 = scmp.lt.u32.totalorder %s3907_s4, %s5064_s0 }
  0x95   : > { %p3909_p12 = pneg %p5115_p9 }
  0x97   : > { %p3910_p0 = pnand %p3909_p12, %p3908_p8 }
  0x99   : > { %p3911_p13 = pneg %p3910_p0 }
  0x9b   : > { %p3916_p11 = pnand %p3914_p6, %p3911_p13 }
  0x9d   : > { %3919 = shalt.err (!%p3916_p11)
}
  0x9e   : > { %s3920_s15 = scalar_lea.vmem %s4338_s2, 512  ;;  %p3928_p3 = scmp.lt.s32.totalorder %s4338_s2, %s4338_s2 }
  0x9f   : > { %p3921_p1 = scmp.ne.s32.totalorder %s4338_s2, %s3920_s15  ;;  %p3929_p10 = scmp.lt.s32.totalorder %s3920_s15, %s3920_s15 }
  0xa1   : > { %p3923_p2 = pnand %p3921_p1, %p3909_p12  ;;  %p3930_p5 = por %p3929_p10, %p3928_p3 }
  0xa3   : > { %p3924_p4 = pneg %p3923_p2 }
  0xa5   : > { %p3931_p7 = pnand %p3930_p5, %p3924_p4 }
  0xa7   : > { %3934 = shalt.err (!%p3931_p7)
}
  0xa8   : > { %s5116_s14 = smov 8   ;;  %s5117_s8 = smov 128  }
  0xa9   : > { %3498 = dma.hbm_to_vmem [thread:$0]  (!%p5115_p9), %s5064_s0, 512, %s4338_s2, [#allocation5], %s5117_s8, %s5117_s8, %s5116_s14  }
  0xaa   : > { %s3268_s30 = sshll.u32 %s4071_s20, 5  ;;  %s5118_s19 = sshll.u32 %s4196_s26, 1 }
  0xab   : > { %s444_s29 = scalar_lea.vmem [#allocation12], %s5118_s19  ;;  %s450_s27 = scalar_lea.hbm %s5071_s7, %s3268_s30 }
  0xac   : > { %s452_s16 = sshll.u32 %s444_s29, 4  ;;  %s3935_s21 = scalar_lea.hbm %s450_s27, 32  ;;  %s453_s16 = int_to_ptr.vmem [resolvable:$true] %s452_s16 }
  0xad   : > { %p3936_p5 = scmp.ne.s32.totalorder %s450_s27, %s3935_s21  ;;  %p5119_p7 = scmp.ne.s32.totalorder %s5104_s23, 0 }
  0xae   : > { %s3940_s13 = scalar_lea.hbm %s5071_s7, 64  ;;  %p3941_p9 = scmp.lt.u32.totalorder %s450_s27, %s5071_s7 }
  0xaf   : > { %p3938_p8 = pnand %p3936_p5, %p5119_p7  ;;  %p3942_p0 = scmp.lt.u32.totalorder %s3940_s13, %s3935_s21 }
  0xb0   : > { %p3944_p6 = scmp.lt.u32.totalorder %s3935_s21, %s450_s27 }
  0xb1   : > { %p3939_p12 = pneg %p3938_p8  ;;  %p3943_p13 = por %p3942_p0, %p3941_p9 }
  0xb3   : > { %p3945_p11 = por %p3944_p6, %p3943_p13 }
  0xb5   : > { %p3946_p1 = pnand %p3945_p11, %p3939_p12 }
  0xb7   : > { %3949 = shalt.err (!%p3946_p1)
}
  0xb8   : > { %s3950_s14 = scalar_lea.vmem %s453_s16, 32  ;;  %s4084_s8 = smov [#allocation12]  }
  0xb9   : > { %p3951_p2 = scmp.ne.s32.totalorder %s453_s16, %s3950_s14  ;;  %s3955_s30 = sshll.u32 %s4084_s8, 4  ;;  %s3956_s30 = int_to_ptr.vmem [resolvable:$false] %s3955_s30 }
  0xba   : > { %s3957_s19 = scalar_lea.vmem %s3956_s30, 64  ;;  %p3958_p10 = scmp.lt.s32.totalorder %s453_s16, %s3956_s30 }
  0xbb   : > { %p3953_p4 = pnand %p3951_p2, %p5119_p7  ;;  %p3959_p5 = scmp.lt.s32.totalorder %s3957_s19, %s3950_s14 }
  0xbd   : > { %p3954_p3 = pneg %p3953_p4  ;;  %p3960_p8 = por %p3959_p5, %p3958_p10 }
  0xbf   : > { %p3961_p0 = pnand %p3960_p8, %p3954_p3 }
  0xc1   : > { %3964 = shalt.err (!%p3961_p0)
}
  0xc2   : > { %p5120_p9 = scmp.ne.s32.totalorder %s5102_s28, 0  ;;  %s5121_s10 = scalar_lea.sflag [#allocation11], %s4193_s25 }
  0xc3   : > { %s3137_s29 = sshll.u32 %s4071_s20, 4  ;;  %s483_s15 = scalar_lea.vmem [#allocation15], %s4196_s26 }
  0xc4   : > { %3511 = dma.hbm_to_vmem [thread:$0]  (!%p5120_p9), %s450_s27, 32, %s453_s16, %s5121_s10  }
  0xc5   : > { %s4432_s21 = scalar_lea.hbm %s5073_s9, %s3137_s29  ;;  %s490_s4 = sshll.u32 %s483_s15, 4  ;;  %s491_s4 = int_to_ptr.vmem [resolvable:$true] %s490_s4 }
  0xc6   : > { %s3965_s13 = scalar_lea.hbm %s4432_s21, 16  ;;  %s3970_s20 = scalar_lea.hbm %s5073_s9, 32 }
  0xc7   : > { %p3966_p12 = scmp.ne.s32.totalorder %s4432_s21, %s3965_s13  ;;  %p3971_p11 = scmp.lt.u32.totalorder %s4432_s21, %s5073_s9 }
  0xc8   : > { %p3972_p1 = scmp.lt.u32.totalorder %s3970_s20, %s3965_s13  ;;  %p3974_p4 = scmp.lt.u32.totalorder %s3965_s13, %s4432_s21 }
  0xc9   : > { %p3968_p13 = pnand %p3966_p12, %p5119_p7 }
  0xca   : > { %p3973_p2 = por %p3972_p1, %p3971_p11 }
  0xcb   : > { %p3969_p6 = pneg %p3968_p13 }
  0xcc   : > { %p3975_p3 = por %p3974_p4, %p3973_p2 }
  0xce   : > { %p3976_p10 = pnand %p3975_p3, %p3969_p6 }
  0xd0   : > { %3979 = shalt.err (!%p3976_p10)
}
  0xd1   : > { %s3980_s26 = scalar_lea.vmem %s491_s4, 16  ;;  %s4085_s8 = smov [#allocation15]  }
  0xd2   : > { %p3981_p5 = scmp.ne.s32.totalorder %s491_s4, %s3980_s26  ;;  %s3985_s30 = sshll.u32 %s4085_s8, 4  ;;  %s3986_s30 = int_to_ptr.vmem [resolvable:$false] %s3985_s30 }
  0xd3   : > { %s3987_s19 = scalar_lea.vmem %s3986_s30, 32  ;;  %p3988_p12 = scmp.lt.s32.totalorder %s491_s4, %s3986_s30 }
  0xd4   : > { %p3983_p8 = pnand %p3981_p5, %p5119_p7  ;;  %p3989_p13 = scmp.lt.s32.totalorder %s3987_s19, %s3980_s26 }
  0xd6   : > { %p3984_p0 = pneg %p3983_p8  ;;  %p3990_p9 = por %p3989_p13, %p3988_p12 }
  0xd8   : > { %p3991_p1 = pnand %p3990_p9, %p3984_p0 }
  0xda   : > { %3994 = shalt.err (!%p3991_p1)
}
  0xdb   : > { %p5122_p11 = scmp.ne.s32.totalorder %s5102_s28, 0  ;;  %s5123_s10 = scalar_lea.sflag [#allocation14], %s4193_s25 }
  0xdc   : > { %p5124_p6 = scmp.ne.s32.totalorder %s5109_s22, 0 }
  0xdd   : > { %3517 = dma.hbm_to_vmem [thread:$0]  (!%p5122_p11), %s4432_s21, 16, %s491_s4, %s5123_s10  }
  0xde   : > { %499 = sbr.rel (%p5124_p6) target bundleno = 3329 (0xd01), region = 60  ;;  %p5125_p7 = scmp.eq.s32.totalorder (!%p5124_p6), %s4320_s24, 0 }
  0xe5   : > { %4038 = dma.done.wait (%p5125_p7), [#allocation5], 512   ;;  %p5126_p2 = pmov %p5125_p7 }
  0xe6   : > { %s505_s23 = sand.u32 1, %s4320_s24   ;;  %s4462_s29 = sand.u32 1, %s4063_s18  }
  0xe7   : > { %4040 = vsyncadd (%p5126_p2), [#allocation5], 4294966784  ;;  %s3473_s28 = smul.u32 384, %s4462_s29  ;;  %s506_s25 = scalar_lea.sflag [#allocation8], %s505_s23 }
  0xe8   : > { %p5127_p9 = scmp.ne.s32.totalorder %s5108_s12, 0 }
  0xe9   : > { %s4465_s17 = scalar_lea.vmem [#allocation7], %s3473_s28 }
  0xea   : > { %4042 = dma.done.wait (%p5127_p9), %s506_s25, 8192  }
  0xeb   : > { %4044 = vsyncadd (%p5127_p9), %s506_s25, 4294959104  ;;  %s3140_s22 = sshll.u32 %s4462_s29, 7  ;;  %s524_s21 = scalar_lea.sflag [#allocation11], %s505_s23 }
  0xec   : > { %s4472_s6 = scalar_lea.vmem [#allocation9], %s3140_s22  ;;  %s4474_s15 = scalar_lea.vmem [#allocation10], %s3140_s22 }
  0xed   : > { %4046 = dma.done.wait (%p5127_p9), %s524_s21, 2080  }
  0xee   : > { %4048 = vsyncadd (%p5127_p9), %s524_s21, 4294965216  ;;  %s3142_s4 = sshll.u32 %s4462_s29, 1  ;;  %s542_s2 = scalar_lea.sflag [#allocation14], %s505_s23 }
  0xef   : > { %s4481_s13 = scalar_lea.vmem [#allocation12], %s3142_s4  ;;  %s4483_s16 = scalar_lea.vmem [#allocation13], %s3140_s22 }
  0xf0   : > { %4050 = dma.done.wait (%p5127_p9), %s542_s2, 2064  }
  0xf1   : > { %4052 = vsyncadd (%p5127_p9), %s542_s2, 4294965232  ;;  %p623_p4 = scmp.lt.s32.totalorder %s4320_s24, 1  ;;  %s553_s22 = scalar_lea.vmem [#allocation15], %s4462_s29 }
  0xf2   : > { %p5128_p3 = scmp.ne.s32.totalorder %s4320_s24, 0 }
  0xf3   : > { %s4491_s20 = scalar_select %p623_p4, %s4320_s24, 1 }
  0xf4   : > { %639 = sbr.rel (%p5128_p3) target bundleno = 251 (0xfb), region = 92  ;;  %v640_v0 = vld [vmem:[#allocation4] sm:$0xff] (!%p5128_p3)  ;;  %v641_v2 = vld [vmem:[#allocation4 + $0x8] sm:$0xff] (!%p5128_p3)  ;;  %v648_v5 = vld [vmem:[#allocation4 + $0x10] sm:$0xff] (!%p5128_p3) }
  0xf5   : > { %s3474_s27 = smul.u32 6, %s4491_s20  ;;  %s629_s8 = scalar_lea.vmem %s5069_s5, %s4491_s20  ;;  %v642_v1 = vld [vmem:[%s5065_s1] sm:$0xff] (!%p5128_p3)  ;;  %v643_v4 = vld [vmem:[%s5065_s1 + $0x8] sm:$0xff] (!%p5128_p3)  ;;  %v649_v6 = vld [vmem:[#allocation4 + $0x18] sm:$0xff] (!%p5128_p3) }
  0xf6   : > { %s3270_s30 = sshll.u32 %s4491_s20, 4  ;;  %v644_v3 = vadd.f32 (!%p5128_p3), %v642_v1, %v640_v0  ;;  %v645_v7 = vadd.f32 (!%p5128_p3), %v643_v4, %v641_v2  ;;  %v652_v8 = vadd.f32 (!%p5128_p3), %v648_v5, %v642_v1  ;;  %v653_v9 = vadd.f32 (!%p5128_p3), %v649_v6, %v643_v4 }
  0xf7   : > { %s4502_s12 = scalar_lea.vmem %s5067_s3, %s3474_s27  ;;  %s4507_s25 = scalar_lea.vmem %s5075_s11, %s3270_s30 }
  0xf8   : > { %646 = vst [vmem:[#allocation2] sm:$0xff] (!%p5128_p3), %v644_v3  ;;  %647 = vst [vmem:[#allocation2 + $0x8] sm:$0xff] (!%p5128_p3), %v645_v7 }
  0xf9   : > { %654 = vst [vmem:[#allocation2 + $0x10] sm:$0xff] (!%p5128_p3), %v652_v8  ;;  %655 = vst [vmem:[#allocation2 + $0x18] sm:$0xff] (!%p5128_p3), %v653_v9 }
  0xfb PF: > { %v3575_v10 = vld [vmem:[%s4465_s17 + $0xc] ss:$24 sps:$4 sm:$0xff]   ;;  %v3577_v11 = vld [vmem:[%s4465_s17 + $0x8] ss:$24 sps:$4 sm:$0xff]   ;;  %v4086_v12 = vmov 0   ;;  %v4087_v1 = vmov 0.0   ;;  %v712_v2 = vlaneseq }
  0xfc   : > { %1067 = vmatprep.mubr.bf16.mxu1 %v4086_v12  ;;  %1014 = vmatprep.mubr.bf16.mxu0 %v4086_v12  ;;  %v3578_v13 = vld [vmem:[%s4465_s17 + $0x3c] ss:$24 sps:$4 sm:$0xff]   ;;  %v3580_v14 = vld [vmem:[%s4465_s17 + $0x38] ss:$24 sps:$4 sm:$0xff]   ;;  %v3584_v17 = vld [vmem:[%s4465_s17 + $0x6c] ss:$24 sps:$4 sm:$0xff]  }
  0xfd   : > { %1035 = vmatprep.subr.bf16.mxu1 %v3575_v10  ;;  %v3581_v15 = vld [vmem:[%s4465_s17 + $0x4] ss:$24 sps:$4 sm:$0xff]   ;;  %v3583_v16 = vld [vmem:[%s4465_s17] ss:$24 sps:$4 sm:$0xff]   ;;  %v3587_v18 = vld [vmem:[%s4465_s17 + $0x34] ss:$24 sps:$4 sm:$0xff]  }
  0xfe   : > { %1036 = vmatpush1.bf16.msra.mxu1 %v3577_v11  ;;  %982 = vmatprep.subr.bf16.mxu0 %v3581_v15  ;;  %v3589_v19 = vld [vmem:[%s4465_s17 + $0x30] ss:$24 sps:$4 sm:$0xff]   ;;  %v3590_v21 = vld [vmem:[%s4465_s17 + $0x9c] ss:$24 sps:$4 sm:$0xff]   ;;  %v3595_v23 = vld [vmem:[%s4465_s17 + $0x60] ss:$24 sps:$4 sm:$0xff]  }
  0xff   : > { %1037 = vmatprep.subr.bf16.mxu1 %v3578_v13  ;;  %983 = vmatpush1.bf16.msra.mxu0 %v3583_v16  ;;  %v3586_v20 = vld [vmem:[%s4465_s17 + $0x68] ss:$24 sps:$4 sm:$0xff]   ;;  %v3593_v22 = vld [vmem:[%s4465_s17 + $0x64] ss:$24 sps:$4 sm:$0xff]   ;;  %v3592_v24 = vld [vmem:[%s4465_s17 + $0x98] ss:$24 sps:$4 sm:$0xff]  }
 0x100   : > { %984 = vmatprep.subr.bf16.mxu0 %v3587_v18  ;;  %v3599_v25 = vld [vmem:[%s4465_s17 + $0x94] ss:$24 sps:$4 sm:$0xff]   ;;  %v3601_v27 = vld [vmem:[%s4465_s17 + $0x90] ss:$24 sps:$4 sm:$0xff]   ;;  %v3605_v29 = vld [vmem:[%s4465_s17 + $0xc4] ss:$24 sps:$4 sm:$0xff]  }
 0x101   : > { %v3596_v26 = vld [vmem:[%s4465_s17 + $0xcc] ss:$24 sps:$4 sm:$0xff]   ;;  %v3598_v28 = vld [vmem:[%s4465_s17 + $0xc8] ss:$24 sps:$4 sm:$0xff]   ;;  %v3602_v30 = vld [vmem:[%s4465_s17 + $0xfc] ss:$24 sps:$4 sm:$0xff]  }
 0x102   : > { %1038 = vmatpush1.bf16.msra.mxu1 %v3580_v14  ;;  %v3607_v31 = vld [vmem:[%s4465_s17 + $0xc0] ss:$24 sps:$4 sm:$0xff]   ;;  %v3611_v33 = vld [vmem:[%s4465_s17 + $0xf4] ss:$24 sps:$4 sm:$0xff]   ;;  %v3613_v36 = vld [vmem:[%s4465_s17 + $0xf0] ss:$24 sps:$4 sm:$0xff]  }
 0x103   : > { %1039 = vmatprep.subr.bf16.mxu1 %v3584_v17  ;;  %985 = vmatpush1.bf16.msra.mxu0 %v3589_v19  ;;  %v3604_v32 = vld [vmem:[%s4465_s17 + $0xf8] ss:$24 sps:$4 sm:$0xff]   ;;  %v3608_v34 = vld [vmem:[%s4465_s17 + $0x12c] ss:$24 sps:$4 sm:$0xff]   ;;  %v3610_v35 = vld [vmem:[%s4465_s17 + $0x128] ss:$24 sps:$4 sm:$0xff]  }
 0x104   : > { %986 = vmatprep.subr.bf16.mxu0 %v3593_v22  ;;  %v3617_v37 = vld [vmem:[%s4465_s17 + $0x124] ss:$24 sps:$4 sm:$0xff]   ;;  %v3616_v39 = vld [vmem:[%s4465_s17 + $0x158] ss:$24 sps:$4 sm:$0xff]   ;;  %v657_v42 = vld [vmem:[#allocation2 + $0x8] sm:$0xff]  ;;  %vm4088_vm0 = vmmov 0  }
 0x105   : > { %v3614_v38 = vld [vmem:[%s4465_s17 + $0x15c] ss:$24 sps:$4 sm:$0xff]   ;;  %v3619_v40 = vld [vmem:[%s4465_s17 + $0x120] ss:$24 sps:$4 sm:$0xff]   ;;  %v3622_v46 = vld [vmem:[%s4465_s17 + $0x150] ss:$24 sps:$4 sm:$0xff]  }
 0x106   : > { %1040 = vmatpush1.bf16.msra.mxu1 %v3586_v20  ;;  %v656_v41 = vld [vmem:[#allocation2] sm:$0xff]  ;;  %v3620_v43 = vld [vmem:[%s4465_s17 + $0x154] ss:$24 sps:$4 sm:$0xff]   ;;  %v3623_v47 = vld [vmem:[%s4465_s17 + $0x10] ss:$24 sps:$4 sm:$0xff]   ;;  %v4583_v3 = vshrl.u32 %v712_v2, 7 }
 0x107   : > { %1041 = vmatprep.subr.bf16.mxu1 %v3590_v21  ;;  %987 = vmatpush1.bf16.msra.mxu0 %v3595_v23  ;;  %v3625_v44 = vld [vmem:[%s4465_s17 + $0x14] ss:$24 sps:$4 sm:$0xff]   ;;  %v4552_v45 = vpack.c.bf16 %v657_v42, %v656_v41  ;;  %v3628_v48 = vld [vmem:[%s4465_s17 + $0x44] ss:$24 sps:$4 sm:$0xff]   ;;  %v3626_v49 = vld [vmem:[%s4465_s17 + $0x40] ss:$24 sps:$4 sm:$0xff]  }
 0x108   : > { %988 = vmatprep.subr.bf16.mxu0 %v3599_v25  ;;  %v658_v50 = vld [vmem:[#allocation2 + $0x10] sm:$0xff]  ;;  %v659_v51 = vld [vmem:[#allocation2 + $0x18] sm:$0xff]  ;;  %v722_v4 = vsub.s32 2, %v4583_v3  ;;  %v710_v5 = vld [vmem:[%s4502_s12] sm:$0x3f]  ;;  %v726_v6 = vsub.s32 3, %v4583_v3 }
 0x109   : > { %v3631_v52 = vld [vmem:[%s4465_s17 + $0x74] ss:$24 sps:$4 sm:$0xff]   ;;  %v3629_v53 = vld [vmem:[%s4465_s17 + $0x70] ss:$24 sps:$4 sm:$0xff]   ;;  %v3634_v54 = vld [vmem:[%s4465_s17 + $0xa4] ss:$24 sps:$4 sm:$0xff]   ;;  %v661_v55 = vpack.c.bf16 %v659_v51, %v658_v50 }
 0x10a   : > { %1042 = vmatpush1.bf16.msra.mxu1 %v3592_v24  ;;  %v3632_v56 = vld [vmem:[%s4465_s17 + $0xa0] ss:$24 sps:$4 sm:$0xff]   ;;  %v3637_v57 = vld [vmem:[%s4465_s17 + $0xd4] ss:$24 sps:$4 sm:$0xff]   ;;  %v3635_v58 = vld [vmem:[%s4465_s17 + $0xd0] ss:$24 sps:$4 sm:$0xff]   ;;  %v723_v9 = vrot.slane %v710_v5, %v722_v4  ;;  %v727_v11 = vrot.slane %v710_v5, %v726_v6 }
 0x10b   : > { %1043 = vmatprep.subr.bf16.mxu1 %v3596_v26  ;;  %989 = vmatpush1.bf16.msra.mxu0 %v3601_v27  ;;  %v3640_v59 = vld [vmem:[%s4465_s17 + $0x104] ss:$24 sps:$4 sm:$0xff]   ;;  %v3638_v60 = vld [vmem:[%s4465_s17 + $0x100] ss:$24 sps:$4 sm:$0xff]   ;;  %v3643_v61 = vld [vmem:[%s4465_s17 + $0x134] ss:$24 sps:$4 sm:$0xff]  }
 0x10c   : > { %990 = vmatprep.subr.bf16.mxu0 %v3605_v29  ;;  %v3641_v62 = vld [vmem:[%s4465_s17 + $0x130] ss:$24 sps:$4 sm:$0xff]   ;;  %v3646_v63 = vld [vmem:[%s4465_s17 + $0x164] ss:$24 sps:$4 sm:$0xff]   ;;  %v3644_v0 = vld [vmem:[%s4465_s17 + $0x160] ss:$24 sps:$4 sm:$0xff]  }
 0x10d   : > { %v714_v7 = vsub.s32 0, %v4583_v3  ;;  %v718_v8 = vsub.s32 1, %v4583_v3  ;;  %vm1143_vm1 = vcmask 523264   ;;  %vm1193_vm2 = vcmask 130048   ;;  %s4089_s17 = smov 64   ;;  %s4090_s29 = smov 16  }
 0x10e   : > { %1044 = vmatpush1.bf16.msra.mxu1 %v3598_v28  ;;  %vm1408_vm3 = vcmask 1048064   ;;  %s4094_s20 = smov 96   ;;  %s4095_s26 = smov 112   ;;  %vm1351_vm4 = vcmask 261248   ;;  %vm1491_vm5 = vcmask 392448   ;;  %vm1627_vm6 = vcmask 523648  }
 0x10f   : > { %1045 = vmatprep.subr.bf16.mxu1 %v3602_v30  ;;  %991 = vmatpush1.bf16.msra.mxu0 %v3607_v31  ;;  %v715_v13 = vrot.slane %v710_v5, %v714_v7  ;;  %v719_v15 = vrot.slane %v710_v5, %v718_v8  ;;  %vm1766_vm7 = vcmask 654848   ;;  %vm1902_vm8 = vcmask 786048   ;;  %p3261_p10 = scmp.ne.s32.totalorder %s4320_s24, 1 }
 0x110   : > { %992 = vmatprep.subr.bf16.mxu0 %v3611_v33  ;;  %vm2041_vm9 = vcmask 917248   ;;  %vm2177_vm10 = vcmask 1048448  }
 0x112   : > { %1046 = vmatpush1.bf16.msra.mxu1 %v3604_v32 }
 0x113   : > { %1047 = vmatprep.subr.bf16.mxu1 %v3608_v34  ;;  %993 = vmatpush1.bf16.msra.mxu0 %v3613_v36 }
 0x114   : > { %994 = vmatprep.subr.bf16.mxu0 %v3617_v37 }
 0x116   : > { %1048 = vmatpush1.bf16.msra.mxu1 %v3610_v35 }
 0x117   : > { %1049 = vmatprep.subr.bf16.mxu1 %v3614_v38  ;;  %995 = vmatpush1.bf16.msra.mxu0 %v3619_v40 }
 0x118   : > { %996 = vmatprep.subr.bf16.mxu0 %v3620_v43 }
 0x11a   : > { %1050 = vmatpush1.bf16.msra.mxu1 %v3616_v39 }
 0x11b   : > { %3455 = vmatprep.subr.bf16.mxu1 %v3625_v44  ;;  %997 = vmatpush1.bf16.msra.mxu0 %v3622_v46 }
 0x11c   : > { %1088 = vmatprep.subr.bf16.mxu0 %v3625_v44 }
 0x11d   : > { %1068 = vmatmul.mubr.bf16.vlgmr.msra.gmra.mrb[0].mxu1 %v4552_v45 }
 0x11e   : > { %3463 = vmatpush1.bf16.msra.mxu1 %v3623_v47  ;;  %1077 = vmatprep.mubr.bf16.mxu1 %v4086_v12 }
 0x11f   : > { %3456 = vmatprep.subr.bf16.mxu1 %v3628_v48  ;;  %1015 = vmatmul.mubr.bf16.vlgmr.msra.gmra.mrb[0].mxu0 %v4552_v45 }
 0x120   : > { %1089 = vmatpush1.bf16.msra.mxu0 %v3623_v47  ;;  %1024 = vmatprep.mubr.bf16.mxu0 %v4086_v12 }
 0x121   : > { %1090 = vmatprep.subr.bf16.mxu0 %v3628_v48 }
 0x122   : > { %3464 = vmatpush1.bf16.msra.mxu1 %v3626_v49 }
 0x123   : > { %3457 = vmatprep.subr.bf16.mxu1 %v3631_v52 }
 0x124   : > { %1091 = vmatpush1.bf16.msra.mxu0 %v3626_v49 }
 0x125   : > { %1078 = vmatmul.mubr.bf16.gmra.mrb[4].mxu1 %v661_v55  ;;  %1092 = vmatprep.subr.bf16.mxu0 %v3631_v52 }
 0x126   : > { %3465 = vmatpush1.bf16.msra.mxu1 %v3629_v53  ;;  %1130 = vmatprep.mubr.bf16.mxu1 %v4086_v12 }
 0x127   : > { %3458 = vmatprep.subr.bf16.mxu1 %v3634_v54  ;;  %1025 = vmatmul.mubr.bf16.gmra.mrb[4].mxu0 %v661_v55 }
 0x128   : > { %1093 = vmatpush1.bf16.msra.mxu0 %v3629_v53  ;;  %1120 = vmatprep.mubr.bf16.mxu0 %v4086_v12 }
 0x129   : > { %1094 = vmatprep.subr.bf16.mxu0 %v3634_v54 }
 0x12a   : > { %3466 = vmatpush1.bf16.msra.mxu1 %v3632_v56 }
 0x12b   : > { %3459 = vmatprep.subr.bf16.mxu1 %v3637_v57 }
 0x12c   : > { %1095 = vmatpush1.bf16.msra.mxu0 %v3632_v56  ;;  %v730_v56 = vsub.s32 4, %v4583_v3 }
 0x12d   : > { %1096 = vmatprep.subr.bf16.mxu0 %v3637_v57  ;;  %v734_v57 = vsub.s32 5, %v4583_v3 }
 0x12e   : > { %3467 = vmatpush1.bf16.msra.mxu1 %v3635_v58 }
 0x12f   : > { %3460 = vmatprep.subr.bf16.mxu1 %v3640_v59 }
 0x130   : > { %1097 = vmatpush1.bf16.msra.mxu0 %v3635_v58  ;;  %v731_v58 = vrot.slane %v710_v5, %v730_v56 }
 0x131   : > { %1098 = vmatprep.subr.bf16.mxu0 %v3640_v59  ;;  %v735_v59 = vrot.slane %v710_v5, %v734_v57 }
 0x132   : > { %3468 = vmatpush1.bf16.msra.mxu1 %v3638_v60 }
 0x133   : > { %3461 = vmatprep.subr.bf16.mxu1 %v3643_v61 }
 0x134   : > { %1099 = vmatpush1.bf16.msra.mxu0 %v3638_v60 }
 0x135   : > { %1100 = vmatprep.subr.bf16.mxu0 %v3643_v61 }
 0x136   : > { %3469 = vmatpush1.bf16.msra.mxu1 %v3641_v62 }
 0x137   : > { %3462 = vmatprep.subr.bf16.mxu1 %v3646_v63 }
 0x138   : > { %1101 = vmatpush1.bf16.msra.mxu0 %v3641_v62 }
 0x139   : > { %1102 = vmatprep.subr.bf16.mxu0 %v3646_v63 }
 0x13a   : > { %3470 = vmatpush1.bf16.msra.mxu1 %v3644_v0 }
 0x13b   : > { %3359 = vmatprep.subr.bf16.mxu1 %v4087_v1 }
 0x13c   : > { %1103 = vmatpush1.bf16.msra.mxu0 %v3644_v0 }
 0x13d   : > { %1131 = vmatmul.mubr.bf16.vlgmr.msra.gmra.mrb[8].mxu1 %v661_v55  ;;  %3383 = vmatprep.subr.bf16.mxu0 %v4087_v1 }
 0x13e   : > { %3361 = vmatprep.mubr.msk.bf16.mxu1 %vm4088_vm0, %v4087_v1 }
 0x13f   : > { %1121 = vmatmul.mubr.bf16.vlgmr.msra.gmra.mrb[8].mxu0 %v4552_v45 }
 0x140   : > { %3385 = vmatprep.mubr.msk.bf16.mxu0 %vm4088_vm0, %v4087_v1 }
 0x1f0   : > { %v1069_v10 = vpop.f32.mrb[0].mxu1 }
 0x1f1   : > { %v1071_v14 = vpop.f32.mrb[1].mxu1  ;;  %v1070_v17 = vadd.f32 %v1069_v10, %v723_v9 }
 0x1f2   : > { %v1073_v16 = vpop.f32.mrb[2].mxu1  ;;  %v1016_v20 = vpop.f32.mrb[0].mxu0  ;;  %v1072_v21 = vadd.f32 %v1071_v14, %v727_v11 }
 0x1f3   : > { %v1074_v18 = vadd.f32 %v1073_v16, %v723_v9  ;;  %v1075_v19 = vpop.f32.mrb[3].mxu1  ;;  %v1017_v23 = vadd.f32 %v1016_v20, %v715_v13  ;;  %v1018_v24 = vpop.f32.mrb[1].mxu0 }
 0x1f4   : > { %v1076_v22 = vadd.f32 %v1075_v19, %v727_v11  ;;  %v1019_v26 = vadd.f32 %v1018_v24, %v719_v15  ;;  %v1020_v27 = vpop.f32.mrb[2].mxu0 }
 0x1f5   : > { %v4594_v25 = vpack.c.bf16 %v1074_v18, %v1070_v17  ;;  %v1021_v29 = vadd.f32 %v1020_v27, %v715_v13  ;;  %v1022_v30 = vpop.f32.mrb[3].mxu0 }
 0x1f6   : > { %v4596_v28 = vpack.c.bf16 %v1076_v22, %v1072_v21  ;;  %v1023_v32 = vadd.f32 %v1022_v30, %v719_v15 }
 0x1f7   : > { %v1148_v31 = vsel %vm1143_vm1, %v4594_v25, 0  ;;  %v4600_v33 = vpack.c.bf16 %v1021_v29, %v1017_v23 }
 0x1f8   : > { %3360 = vmatpush3.bf16.xpose.msra.mxu1 %v1148_v31  ;;  %v1416_v34 = vsel %vm1143_vm1, %v4596_v28, 0  ;;  %v1079_v35 = vpop.f32.mrb[4].mxu1  ;;  %v4604_v36 = vpack.c.bf16 %v1023_v32, %v1019_v26 }
 0x1f9   : > { %3384 = vmatpush3.bf16.xpose.msra.mxu0 %v1416_v34  ;;  %v1080_v37 = vadd.f32 %v1079_v35, %v723_v9  ;;  %v1081_v38 = vpop.f32.mrb[5].mxu1  ;;  %3365 = vmatprep.subr.bf16.mxu1 %v4087_v1 }
 0x1fa   : > { %v1082_v39 = vadd.f32 %v1081_v38, %v727_v11  ;;  %v1083_v40 = vpop.f32.mrb[6].mxu1  ;;  %3395 = vmatprep.subr.bf16.mxu0 %v4087_v1  ;;  %v1026_v43 = vpop.f32.mrb[4].mxu0 }
 0x1fb   : > { %v1084_v41 = vadd.f32 %v1083_v40, %v723_v9  ;;  %v1085_v42 = vpop.f32.mrb[7].mxu1  ;;  %v1027_v45 = vadd.f32 %v1026_v43, %v715_v13  ;;  %v1028_v46 = vpop.f32.mrb[5].mxu0 }
 0x1fc   : > { %v1086_v44 = vadd.f32 %v1085_v42, %v727_v11  ;;  %v1029_v48 = vadd.f32 %v1028_v46, %v719_v15  ;;  %v1030_v49 = vpop.f32.mrb[6].mxu0 }
 0x1fd   : > { %v4608_v47 = vpack.c.bf16 %v1084_v41, %v1080_v37  ;;  %v1031_v51 = vadd.f32 %v1030_v49, %v715_v13  ;;  %v1032_v52 = vpop.f32.mrb[7].mxu0 }
 0x1fe   : > { %v4610_v50 = vpack.c.bf16 %v1086_v44, %v1082_v39  ;;  %v1033_v53 = vadd.f32 %v1032_v52, %v719_v15 }
 0x1ff   : > { %3362 = vmatmul.mubr.msk.bf16.vlgmr.msra.gmra.mrb[12].mxu1 %vm1143_vm1, %v4600_v33  ;;  %v4616_v54 = vpack.c.bf16 %v1031_v51, %v1027_v45 }
 0x200   : > { %3386 = vmatmul.mubr.msk.bf16.vlgmr.msra.gmra.mrb[12].mxu0 %vm1143_vm1, %v4604_v36  ;;  %3367 = vmatprep.mubr.msk.bf16.mxu1 %vm4088_vm0, %v4087_v1  ;;  %v4620_v55 = vpack.c.bf16 %v1033_v53, %v1029_v48 }
 0x201   : > { %3397 = vmatprep.mubr.msk.bf16.mxu0 %vm4088_vm0, %v4087_v1 }
 0x210   : > { %v1132_v60 = vpop.f32.mrb[8].mxu1 }
 0x211   : > { %v1133_v61 = vadd.f32 %v1132_v60, %v731_v58  ;;  %v1134_v62 = vpop.f32.mrb[9].mxu1  ;;  %v1691_v60 = vsel %vm1143_vm1, %v4608_v47, 0 }
 0x212   : > { %v1135_v63 = vadd.f32 %v1134_v62, %v735_v59  ;;  %v1136_v0 = vpop.f32.mrb[10].mxu1  ;;  %v1122_v6 = vpop.f32.mrb[8].mxu0 }
 0x213   : > { %v1137_v2 = vadd.f32 %v1136_v0, %v731_v58  ;;  %v1138_v4 = vpop.f32.mrb[11].mxu1  ;;  %v1123_v10 = vadd.f32 %v1122_v6, %v731_v58  ;;  %v1124_v11 = vpop.f32.mrb[9].mxu0 }
 0x214   : > { %v1139_v9 = vadd.f32 %v1138_v4, %v735_v59  ;;  %v1125_v14 = vadd.f32 %v1124_v11, %v735_v59  ;;  %v1126_v15 = vpop.f32.mrb[10].mxu0 }
 0x215   : > { %v4626_v13 = vpack.c.bf16 %v1137_v2, %v1133_v61  ;;  %v1127_v17 = vadd.f32 %v1126_v15, %v731_v58  ;;  %v1128_v18 = vpop.f32.mrb[11].mxu0 }
 0x216   : > { %v4628_v16 = vpack.c.bf16 %v1139_v9, %v1135_v63  ;;  %v1129_v5 = vadd.f32 %v1128_v18, %v735_v59  ;;  %v1966_v63 = vsel %vm1143_vm1, %v4610_v50, 0 }
 0x217   : > { %v4630_v19 = vpack.c.bf16 %v1127_v17, %v1123_v10 }
 0x218   : > { %v4632_v20 = vpack.c.bf16 %v1129_v5, %v1125_v14 }
 0x219   : > { %3366 = vmatpush3.bf16.msra.mxu1 %v4630_v19 }
 0x21a   : > { %3371 = vmatprep.subr.bf16.mxu1 %v4087_v1 }
 0x2d2   : > { %v1184_v21 = vpop.f32.mrb[12].mxu1 }
 0x2d3   : > { %v1191_v22 = vmul.f32 0.125, %v1184_v21  ;;  %v3363_v23 = vpop.f32.mrb[13].mxu1  ;;  %v4636_v24 = vpop.f32.mrb[12].mxu0 }
 0x2d4   : > { %v1187_v26 = vpop.f32.mrb[14].mxu1  ;;  %v3387_v27 = vpop.f32.mrb[13].mxu0 }
 0x2d5   : > { %v1192_v29 = vmul.f32 0.125, %v1187_v26  ;;  %v3364_v30 = vpop.f32.mrb[15].mxu1  ;;  %v4638_v31 = vpop.f32.mrb[14].mxu0  ;;  %v1194_v32 = vsel %vm1193_vm2, %v1191_v22, -inf  ;;  %v1459_v26 = vmul.f32 0.125, %v4636_v24 }
 0x2d6   : > { %v3388_v34 = vpop.f32.mrb[15].mxu0  ;;  %1195 = vmax.xlane.f32.xlu0 %v1194_v32 }
 0x2d7   : > { %v1197_v35 = vsel %vm1193_vm2, %v1192_v29, -inf }
 0x2da   : > { %1198 = vmax.xlane.f32.xlu0 %v1197_v35 }
 0x2f0   : > { %1270 = vrot.lane.b32.xlu0 %v4594_v25, %s4089_s17 }
 0x2f4   : > { %1821 = vrot.lane.b32.xlu0 %v4608_v47, %s4089_s17 }
 0x2f8   : > { %2096 = vrot.lane.b32.xlu0 %v4610_v50, %s4089_s17 }
 0x363   : > { %v1196_v37 = vpop.xlane.xlu0 %1195 }
 0x364   : > { %v1200_v38 = vsub.f32 %v1191_v22, %v1196_v37 }
 0x366   : > { %v1202_v39 = vmul.f32 1.442695, %v1200_v38  ;;  %v1460_v38 = vmul.f32 0.125, %v4638_v31 }
 0x367   : > { %v1199_v40 = vpop.xlane.xlu0 %1198 }
 0x368   : > { %3703 = vpow2.f32 %v1202_v39  ;;  %v1201_v41 = vsub.f32 %v1192_v29, %v1199_v40  ;;  %v1461_v39 = vsel %vm1193_vm2, %v1459_v26, -inf }
 0x36a   : > { %v1204_v42 = vmul.f32 1.442695, %v1201_v41 }
 0x36b   : > { %v1271_v56 = vpop.permute.xlu0 %1270 }
 0x36c   : > { %3705 = vpow2.f32 %v1204_v42  ;;  %v1276_v58 = vsel %vm1143_vm1, %v1271_v56, 0 }
 0x36f   : > { %v1822_v61 = vpop.permute.xlu0 %1821 }
 0x370   : > { %v1827_v62 = vsel %vm1143_vm1, %v1822_v61, 0 }
 0x372   : > { %v3704_v43 = vpop.eup %3703 }
 0x373   : > { %v1206_v44 = vsel %vm1193_vm2, %v3704_v43, 0.0 }
 0x374   : > { %1207 = vadd.xlane.f32.xlu1 %v1206_v44  ;;  %v1464_v44 = vsel %vm1193_vm2, %v1460_v38, -inf }
 0x376   : > { %v3706_v45 = vpop.eup %3705 }
 0x377   : > { %v1209_v25 = vsel %vm1193_vm2, %v3706_v45, 0.0 }
 0x378   : > { %1210 = vadd.xlane.f32.xlu1 %v1209_v25 }
 0x389   : > { %1267 = vrot.lane.b32.xlu1 %v4600_v33, %s4089_s17 }
 0x38d   : > { %1546 = vrot.lane.b32.xlu1 %v4596_v28, %s4089_s17 }
 0x391   : > { %1543 = vrot.lane.b32.xlu1 %v4604_v36, %s4089_s17 }
 0x395   : > { %1818 = vrot.lane.b32.xlu1 %v4616_v54, %s4089_s17 }
 0x399   : > { %2093 = vrot.lane.b32.xlu1 %v4620_v55, %s4089_s17 }
 0x401   : > { %v1208_v46 = vpop.xlane.xlu1 %1207 }
 0x402   : > { %3707 = vrcp.f32 %v1208_v46 }
 0x405   : > { %v1211_v48 = vpop.xlane.xlu1 %1210 }
 0x406   : > { %3709 = vrcp.f32 %v1211_v48 }
 0x409   : > { %v1268_v49 = vpop.permute.xlu1 %1267 }
 0x40c   : > { %v3708_v51 = vpop.eup %3707 }
 0x40d   : > { %v1214_v33 = vmul.f32 %v3708_v51, %v3704_v43  ;;  %v1547_v52 = vpop.permute.xlu1 %1546 }
 0x40e   : > { %v1552_v28 = vsel %vm1143_vm1, %v1547_v52, 0 }
 0x40f   : > { %1216 = vst.msk [vmem:[%s4507_s25] sm:$0xff] %vm1193_vm2, %v1214_v33  ;;  %3396 = vmatpush3.bf16.xpose.msra.mxu0 %v1552_v28 }
 0x410   : > { %v3710_v36 = vpop.eup %3709  ;;  %3407 = vmatprep.subr.bf16.mxu0 %v4087_v1 }
 0x411   : > { %v1215_v53 = vmul.f32 %v3710_v36, %v3706_v45  ;;  %v1544_v59 = vpop.permute.xlu1 %1543 }
 0x413   : > { %1217 = vst.msk [vmem:[%s4507_s25 + $0x8] sm:$0xff] %vm1193_vm2, %v1215_v53  ;;  %v1218_v57 = vpack.c.bf16 %v1215_v53, %v1214_v33 }
 0x415   : > { %3368 = vmatmul.mubr.msk.bf16.vlgmr.msra.gmra.mrb[16].mxu1 %vm1193_vm2, %v1218_v57  ;;  %v1819_v47 = vpop.permute.xlu1 %1818 }
 0x416   : > { %3372 = vmatpush3.bf16.xpose.msra.mxu1 %v1276_v58  ;;  %3398 = vmatmul.mubr.msk.bf16.vlgmr.msra.gmra.mrb[16].mxu0 %vm1143_vm1, %v1544_v59 }
 0x417   : > { %3408 = vmatpush3.bf16.xpose.msra.mxu0 %v1691_v60  ;;  %3373 = vmatprep.mubr.msk.bf16.mxu1 %vm4088_vm0, %v4087_v1 }
 0x418   : > { %3409 = vmatprep.mubr.msk.bf16.mxu0 %vm4088_vm0, %v4087_v1  ;;  %3419 = vmatprep.subr.bf16.mxu0 %v4087_v1 }
 0x419   : > { %3377 = vmatprep.subr.bf16.mxu1 %v4087_v1  ;;  %v2094_v2 = vpop.permute.xlu1 %2093 }
 0x41d   : > { %3374 = vmatmul.mubr.msk.bf16.vlgmr.msra.gmra.mrb[20].mxu1 %vm1143_vm1, %v1268_v49 }
 0x41e   : > { %3410 = vmatmul.mubr.msk.bf16.vlgmr.msra.gmra.mrb[20].mxu0 %vm1143_vm1, %v4616_v54  ;;  %3379 = vmatprep.mubr.msk.bf16.mxu1 %vm4088_vm0, %v4087_v1  ;;  %v2097_v54 = vpop.permute.xlu0 %2096 }
 0x41f   : > { %3420 = vmatpush3.bf16.xpose.msra.mxu0 %v1827_v62  ;;  %3421 = vmatprep.mubr.msk.bf16.mxu0 %vm4088_vm0, %v4087_v1  ;;  %v2102_v0 = vsel %vm1143_vm1, %v2097_v54, 0 }
 0x420   : > { %3431 = vmatprep.subr.bf16.mxu0 %v4087_v1 }
 0x426   : > { %3422 = vmatmul.mubr.msk.bf16.vlgmr.msra.gmra.mrb[24].mxu0 %vm1143_vm1, %v1819_v47 }
 0x427   : > { %3432 = vmatpush3.bf16.xpose.msra.mxu0 %v1966_v63  ;;  %3433 = vmatprep.mubr.msk.bf16.mxu0 %vm4088_vm0, %v4087_v1 }
 0x428   : > { %3443 = vmatprep.subr.bf16.mxu0 %v4087_v1 }
 0x42e   : > { %3434 = vmatmul.mubr.msk.bf16.vlgmr.msra.gmra.mrb[28].mxu0 %vm1143_vm1, %v4620_v55 }
 0x42f   : > { %3444 = vmatpush3.bf16.xpose.msra.mxu0 %v2102_v0  ;;  %3445 = vmatprep.mubr.msk.bf16.mxu0 %vm4088_vm0, %v4087_v1 }
 0x436   : > { %3446 = vmatmul.mubr.msk.bf16.vlgmr.msra.gmra.mrb[32].mxu0 %vm1143_vm1, %v2094_v2 }
 0x4e8   : > { %v1257_v50 = vpop.f32.mrb[16].mxu1 }
 0x4e9   : > { %v3369_v4 = vpop.f32.mrb[17].mxu1  ;;  %v1588_v6 = vpop.f32.mrb[16].mxu0 }
 0x4ea   : > { %v1260_v9 = vpop.f32.mrb[18].mxu1  ;;  %v3399_v10 = vpop.f32.mrb[17].mxu0  ;;  %v1595_v43 = vmul.f32 0.125, %v1588_v6 }
 0x4eb   : > { %v1264_v11 = vpack.c.bf16 %v1260_v9, %v1257_v50  ;;  %v3370_v14 = vpop.f32.mrb[19].mxu1  ;;  %v1591_v15 = vpop.f32.mrb[18].mxu0 }
 0x4ec   : > { %v3400_v17 = vpop.f32.mrb[19].mxu0  ;;  %v1596_v35 = vmul.f32 0.125, %v1591_v15  ;;  %v1597_v49 = vsel %vm1193_vm2, %v1595_v43, -inf }
 0x4ed   : > { %1265 = vst.msk [vmem:[#allocation3] sm:$0xff] %vm1143_vm1, %v1264_v11 }
 0x4ee   : > { %v1600_v40 = vsel %vm1193_vm2, %v1596_v35, -inf }
 0x4f0   : > { %v1312_v18 = vpop.f32.mrb[20].mxu1 }
 0x4f1   : > { %v4699_v55 = vmul.f32 0.125, %v1312_v18  ;;  %v3375_v5 = vpop.f32.mrb[21].mxu1  ;;  %v1727_v21 = vpop.f32.mrb[20].mxu0 }
 0x4f2   : > { %v1315_v22 = vpop.f32.mrb[22].mxu1  ;;  %v3411_v23 = vpop.f32.mrb[21].mxu0  ;;  %v1734_v31 = vmul.f32 0.125, %v1727_v21 }
 0x4f3   : > { %v4702_v27 = vmul.f32 0.125, %v1315_v22  ;;  %v3376_v29 = vpop.f32.mrb[23].mxu1  ;;  %v1730_v30 = vpop.f32.mrb[22].mxu0  ;;  %v1321_v32 = vsel %vm1193_vm2, %v4699_v55, -inf }
 0x4f4   : > { %v3412_v34 = vpop.f32.mrb[23].mxu0  ;;  %1322 = vmax.xlane.f32.xlu0 %v1321_v32  ;;  %v1735_v24 = vmul.f32 0.125, %v1730_v30  ;;  %v1736_v53 = vsel %vm1193_vm2, %v1734_v31, -inf }
 0x4f5   : > { %v1324_v37 = vsel %vm1193_vm2, %v4702_v27, -inf }
 0x4f6   : > { %1325 = vmax.xlane.f32.xlu1 %v1324_v37  ;;  %v1739_v48 = vsel %vm1193_vm2, %v1735_v24, -inf }
 0x4f8   : > { %1462 = vmax.xlane.f32.xlu0 %v1461_v39 }
 0x4f9   : > { %v1863_v41 = vpop.f32.mrb[24].mxu0 }
 0x4fa   : > { %1601 = vmax.xlane.f32.xlu1 %v1600_v40  ;;  %v3423_v42 = vpop.f32.mrb[25].mxu0  ;;  %v1870_v28 = vmul.f32 0.125, %v1863_v41 }
 0x4fb   : > { %v1866_v45 = vpop.f32.mrb[26].mxu0 }
 0x4fc   : > { %1465 = vmax.xlane.f32.xlu0 %v1464_v44  ;;  %v4712_v25 = vmul.f32 0.125, %v1866_v45  ;;  %v3424_v46 = vpop.f32.mrb[27].mxu0  ;;  %v1872_v60 = vsel %vm1193_vm2, %v1870_v28, -inf }
 0x4fe   : > { %1740 = vmax.xlane.f32.xlu1 %v1739_v48  ;;  %v1875_v51 = vsel %vm1193_vm2, %v4712_v25, -inf }
 0x500   : > { %1598 = vmax.xlane.f32.xlu0 %v1597_v49 }
 0x501   : > { %v2002_v33 = vpop.f32.mrb[28].mxu0 }
 0x502   : > { %v3435_v52 = vpop.f32.mrb[29].mxu0  ;;  %1876 = vmax.xlane.f32.xlu1 %v1875_v51  ;;  %v4723_v59 = vmul.f32 0.125, %v2002_v33 }
 0x503   : > { %v2005_v36 = vpop.f32.mrb[30].mxu0 }
 0x504   : > { %v4719_v56 = vmul.f32 0.125, %v2005_v36  ;;  %v3436_v57 = vpop.f32.mrb[31].mxu0  ;;  %1737 = vmax.xlane.f32.xlu0 %v1736_v53  ;;  %v2011_v54 = vsel %vm1193_vm2, %v4723_v59, -inf }
 0x506   : > { %v2014_v58 = vsel %vm1193_vm2, %v4719_v56, -inf }
 0x507   : > { %2015 = vmax.xlane.f32.xlu1 %v2014_v58 }
 0x508   : > { %1873 = vmax.xlane.f32.xlu0 %v1872_v60 }
 0x509   : > { %v2138_v61 = vpop.f32.mrb[32].mxu0 }
 0x50a   : > { %v3447_v62 = vpop.f32.mrb[33].mxu0  ;;  %v4726_v47 = vmul.f32 0.125, %v2138_v61 }
 0x50b   : > { %v2141_v63 = vpop.f32.mrb[34].mxu0 }
 0x50c   : > { %v4730_v0 = vmul.f32 0.125, %v2141_v63  ;;  %v3448_v2 = vpop.f32.mrb[35].mxu0  ;;  %2012 = vmax.xlane.f32.xlu0 %v2011_v54  ;;  %v2147_v4 = vsel %vm1193_vm2, %v4726_v47, -inf }
 0x50e   : > { %v2150_v50 = vsel %vm1193_vm2, %v4730_v0, -inf }
 0x50f   : > { %2151 = vmax.xlane.f32.xlu1 %v2150_v50 }
 0x510   : > { %2148 = vmax.xlane.f32.xlu0 %v2147_v4 }
 0x581   : > { %v1323_v6 = vpop.xlane.xlu0 %1322 }
 0x582   : > { %v1327_v34 = vsub.f32 %v4699_v55, %v1323_v6 }
 0x583   : > { %v4736_v9 = vpop.xlane.xlu1 %1325 }
 0x584   : > { %v1329_v42 = vmul.f32 1.442695, %v1327_v34 }
 0x585   : > { %v1463_v10 = vpop.xlane.xlu0 %1462 }
 0x586   : > { %v1467_v11 = vsub.f32 %v1459_v26, %v1463_v10 }
 0x587   : > { %v1602_v14 = vpop.xlane.xlu1 %1601 }
 0x588   : > { %v1469_v15 = vmul.f32 1.442695, %v1467_v11  ;;  %v1604_v17 = vsub.f32 %v1596_v35, %v1602_v14 }
 0x589   : > { %v1466_v18 = vpop.xlane.xlu0 %1465 }
 0x58a   : > { %3711 = vpow2.f32 %v1469_v15  ;;  %v1468_v5 = vsub.f32 %v1460_v38, %v1466_v18  ;;  %v1607_v22 = vmul.f32 1.442695, %v1604_v17 }
 0x58b   : > { %v1741_v21 = vpop.xlane.xlu1 %1740 }
 0x58c   : > { %v1471_v23 = vmul.f32 1.442695, %v1468_v5  ;;  %v1743_v29 = vsub.f32 %v1735_v24, %v1741_v21 }
 0x58d   : > { %v1599_v30 = vpop.xlane.xlu0 %1598 }
 0x58e   : > { %3713 = vpow2.f32 %v1471_v23  ;;  %v1603_v32 = vsub.f32 %v1595_v43, %v1599_v30  ;;  %v1746_v37 = vmul.f32 1.442695, %v1743_v29 }
 0x58f   : > { %3715 = vpow2.f32 %v1607_v22  ;;  %v1877_v40 = vpop.xlane.xlu1 %1876 }
 0x590   : > { %v1605_v39 = vmul.f32 1.442695, %v1603_v32  ;;  %v1879_v38 = vsub.f32 %v4712_v25, %v1877_v40 }
 0x591   : > { %v1738_v26 = vpop.xlane.xlu0 %1737 }
 0x592   : > { %3717 = vpow2.f32 %v1605_v39  ;;  %v1742_v41 = vsub.f32 %v1734_v31, %v1738_v26  ;;  %v1882_v46 = vmul.f32 1.442695, %v1879_v38 }
 0x593   : > { %3719 = vpow2.f32 %v1746_v37 }
 0x594   : > { %v4739_v35 = vpop.eup %3711  ;;  %v1744_v44 = vmul.f32 1.442695, %v1742_v41  ;;  %v2016_v31 = vpop.xlane.xlu1 %2015 }
 0x595   : > { %v1874_v24 = vpop.xlane.xlu0 %1873  ;;  %v1473_v43 = vsel %vm1193_vm2, %v4739_v35, 0.0 }
 0x596   : > { %3721 = vpow2.f32 %v1744_v44  ;;  %v1878_v55 = vsub.f32 %v1870_v28, %v1874_v24  ;;  %1474 = vadd.xlane.f32.xlu0 %v1473_v43  ;;  %v2018_v28 = vsub.f32 %v4719_v56, %v2016_v31 }
 0x597   : > { %3723 = vpow2.f32 %v1329_v42 }
 0x598   : > { %v4744_v45 = vpop.eup %3713  ;;  %v1880_v48 = vmul.f32 1.442695, %v1878_v55  ;;  %v2021_v61 = vmul.f32 1.442695, %v2018_v28 }
 0x599   : > { %v2013_v49 = vpop.xlane.xlu0 %2012  ;;  %v1476_v51 = vsel %vm1193_vm2, %v4744_v45, 0.0  ;;  %v4748_v33 = vpop.eup %3715 }
 0x59a   : > { %3725 = vpow2.f32 %v1880_v48  ;;  %v2017_v25 = vsub.f32 %v4723_v59, %v2013_v49  ;;  %1477 = vadd.xlane.f32.xlu1 %v1476_v51  ;;  %v1612_v57 = vsel %vm1193_vm2, %v4748_v33, 0.0  ;;  %v1328_v59 = vsub.f32 %v4702_v27, %v4736_v9 }
 0x59b   : > { %3727 = vpow2.f32 %v1882_v46 }
 0x59c   : > { %v4751_v52 = vpop.eup %3717  ;;  %v2019_v36 = vmul.f32 1.442695, %v2017_v25  ;;  %v1331_v2 = vmul.f32 1.442695, %v1328_v59  ;;  %v2152_v22 = vpop.xlane.xlu1 %2151 }
 0x59d   : > { %v1609_v53 = vsel %vm1193_vm2, %v4751_v52, 0.0  ;;  %v4758_v58 = vpop.eup %3719  ;;  %v2149_v18 = vpop.xlane.xlu0 %2148  ;;  %v2154_v23 = vsub.f32 %v4730_v0, %v2152_v22 }
 0x59e   : > { %1610 = vadd.xlane.f32.xlu0 %v1609_v53  ;;  %1613 = vadd.xlane.f32.xlu1 %v1612_v57  ;;  %3729 = vpow2.f32 %v2019_v36  ;;  %v1751_v62 = vsel %vm1193_vm2, %v4758_v58, 0.0  ;;  %v2153_v5 = vsub.f32 %v4726_v47, %v2149_v18 }
 0x59f   : > { %3731 = vpow2.f32 %v2021_v61  ;;  %v2157_v30 = vmul.f32 1.442695, %v2154_v23  ;;  %v3648_v23 = vld [vmem:[%s4472_s6] sm:$0xff]  }
 0x5a0   : > { %v4760_v60 = vpop.eup %3721  ;;  %3733 = vpow2.f32 %v1331_v2  ;;  %v2155_v21 = vmul.f32 1.442695, %v2153_v5 }
 0x5a1   : > { %v1748_v56 = vsel %vm1193_vm2, %v4760_v60, 0.0  ;;  %v4768_v63 = vpop.eup %3723 }
 0x5a2   : > { %1749 = vadd.xlane.f32.xlu0 %v1748_v56  ;;  %1752 = vadd.xlane.f32.xlu1 %v1751_v62  ;;  %v1333_v50 = vsel %vm1193_vm2, %v4768_v63, 0.0  ;;  %3735 = vpow2.f32 %v2155_v21 }
 0x5a3   : > { %3737 = vpow2.f32 %v2157_v30  ;;  %v3649_v30 = vld [vmem:[%s4472_s6 + $0x48] sm:$0xff]  }
 0x5a4   : > { %v4770_v54 = vpop.eup %3725 }
 0x5a5   : > { %v1884_v27 = vsel %vm1193_vm2, %v4770_v54, 0.0  ;;  %v4776_v4 = vpop.eup %3727 }
 0x5a6   : > { %1334 = vadd.xlane.f32.xlu0 %v1333_v50  ;;  %1885 = vadd.xlane.f32.xlu1 %v1884_v27  ;;  %v1887_v6 = vsel %vm1193_vm2, %v4776_v4, 0.0 }
 0x5a8   : > { %v4780_v9 = vpop.eup %3729 }
 0x5a9   : > { %v2023_v10 = vsel %vm1193_vm2, %v4780_v9, 0.0  ;;  %v4784_v11 = vpop.eup %3731 }
 0x5aa   : > { %1888 = vadd.xlane.f32.xlu1 %v1887_v6  ;;  %v2026_v14 = vsel %vm1193_vm2, %v4784_v11, 0.0  ;;  %v3734_v15 = vpop.eup %3733 }
 0x5ab   : > { %v1336_v17 = vsel %vm1193_vm2, %v3734_v15, 0.0 }
 0x5ac   : > { %v4795_v29 = vpop.eup %3735 }
 0x5ad   : > { %v2159_v32 = vsel %vm1193_vm2, %v4795_v29, 0.0 }
 0x5ae   : > { %2024 = vadd.xlane.f32.xlu1 %v2023_v10 }
 0x5b2   : > { %2027 = vadd.xlane.f32.xlu1 %v2026_v14 }
 0x5b6   : > { %1337 = vadd.xlane.f32.xlu1 %v1336_v17 }
 0x5bc   : > { %1356 = vrot.lane.b32.xlu0 %v4630_v19, %s4089_s17  ;;  %v4799_v19 = vpop.eup %3737 }
 0x5bd   : > { %v2162_v47 = vsel %vm1193_vm2, %v4799_v19, 0.0 }
 0x5c7   : > { %1632 = vrot.lane.b32.xlu1 %v4632_v20, %s4089_s17 }
 0x5db   : > { %2160 = vadd.xlane.f32.xlu0 %v2159_v32  ;;  %v3651_v32 = vld [vmem:[%s4472_s6 + $0x50] sm:$0xff]  }
 0x5eb   : > { %2163 = vadd.xlane.f32.xlu1 %v2162_v47  ;;  %v3653_v47 = vld [vmem:[%s4472_s6 + $0x58] sm:$0xff]  }
 0x5f1   : > { %1907 = vrot.lane.b32.xlu0 %v4626_v13, %s4089_s17 }
 0x5fc   : > { %2182 = vrot.lane.b32.xlu1 %v4628_v16, %s4089_s17 }
 0x623   : > { %v1475_v0 = vpop.xlane.xlu0 %1474 }
 0x627   : > { %v1478_v34 = vpop.xlane.xlu1 %1477 }
 0x62b   : > { %v1611_v37 = vpop.xlane.xlu0 %1610  ;;  %v1614_v39 = vpop.xlane.xlu1 %1613 }
 0x62f   : > { %v1750_v40 = vpop.xlane.xlu0 %1749  ;;  %v1753_v26 = vpop.xlane.xlu1 %1752 }
 0x633   : > { %v1335_v41 = vpop.xlane.xlu0 %1334  ;;  %v1886_v42 = vpop.xlane.xlu1 %1885 }
 0x634   : > { %3739 = vrcp.f32 %v1335_v41 }
 0x637   : > { %v1357_v38 = vpop.permute.xlu0 %1356  ;;  %v1889_v44 = vpop.xlane.xlu1 %1888 }
 0x638   : > { %3378 = vmatpush3.bf16.msra.mxu1 %v1357_v38  ;;  %v3657_v38 = vld [vmem:[%s4472_s6 + $0x68] sm:$0xff]  }
 0x639   : > { %3389 = vmatprep.subr.bf16.mxu1 %v4087_v1 }
 0x63b   : > { %v2025_v24 = vpop.xlane.xlu1 %2024 }
 0x63e   : > { %v3740_v46 = vpop.eup %3739 }
 0x63f   : > { %v2028_v43 = vpop.xlane.xlu1 %2027  ;;  %v4809_v31 = vmul.f32 %v3740_v46, %v4768_v63 }
 0x643   : > { %v1338_v55 = vpop.xlane.xlu1 %1337 }
 0x644   : > { %3741 = vrcp.f32 %v1338_v55 }
 0x645   : > { %3743 = vrcp.f32 %v1478_v34  ;;  %v3655_v34 = vld [vmem:[%s4472_s6 + $0x60] sm:$0xff]  }
 0x646   : > { %3745 = vrcp.f32 %v1475_v0  ;;  %v3654_v0 = vld [vmem:[%s4472_s6 + $0x18] sm:$0xff]  }
 0x647   : > { %3747 = vrcp.f32 %v1611_v37  ;;  %v1633_v56 = vpop.permute.xlu1 %1632  ;;  %v3656_v37 = vld [vmem:[%s4472_s6 + $0x20] sm:$0xff]  }
 0x648   : > { %3749 = vrcp.f32 %v1614_v39 }
 0x649   : > { %3751 = vrcp.f32 %v1750_v40 }
 0x64a   : > { %3753 = vrcp.f32 %v1753_v26 }
 0x64b   : > { %3755 = vrcp.f32 %v1889_v44 }
 0x64c   : > { %3757 = vrcp.f32 %v1886_v42 }
 0x64d   : > { %3759 = vrcp.f32 %v2028_v43 }
 0x64e   : > { %v3742_v48 = vpop.eup %3741  ;;  %3761 = vrcp.f32 %v2025_v24  ;;  %v3658_v24 = vld [vmem:[%s4472_s6 + $0x28] sm:$0xff]  }
 0x64f   : > { %v4811_v49 = vmul.f32 %v3742_v48, %v3734_v15  ;;  %v3744_v25 = vpop.eup %3743 }
 0x650   : > { %v3746_v28 = vpop.eup %3745  ;;  %v4820_v36 = vmul.f32 %v3744_v25, %v4744_v45  ;;  %v3660_v25 = vld [vmem:[%s4472_s6 + $0x30] sm:$0xff]  }
 0x651   : > { %v1354_v51 = vpack.c.bf16 %v4811_v49, %v4809_v31  ;;  %v4824_v53 = vmul.f32 %v3746_v28, %v4739_v35  ;;  %v3748_v57 = vpop.eup %3747  ;;  %v3661_v28 = vld [vmem:[%s4472_s6 + $0x78] sm:$0xff]  }
 0x652   : > { %v3750_v61 = vpop.eup %3749 }
 0x653   : > { %3380 = vmatmul.mubr.msk.bf16.vlgmr.msra.gmra.mrb[24].mxu1 %vm1193_vm2, %v1354_v51  ;;  %v1494_v59 = vpack.c.bf16 %v4820_v36, %v4824_v53  ;;  %v4835_v35 = vmul.f32 %v3750_v61, %v4748_v33  ;;  %v3752_v45 = vpop.eup %3751  ;;  %v3659_v51 = vld [vmem:[%s4472_s6 + $0x70] sm:$0xff]  }
 0x654   : > { %3390 = vmatpush3.bf16.msra.mxu1 %v4632_v20  ;;  %3391 = vmatprep.mubr.msk.bf16.mxu1 %vm4088_vm0, %v4087_v1  ;;  %v4832_v20 = vmul.f32 %v3748_v57, %v4751_v52  ;;  %v3754_v63 = vpop.eup %3753  ;;  %v4845_v52 = vmul.f32 %v3752_v45, %v4760_v60 }
 0x655   : > { %3401 = vmatprep.subr.bf16.mxu1 %v4087_v1  ;;  %v4848_v33 = vmul.f32 %v3754_v63, %v4758_v58  ;;  %v3756_v27 = vpop.eup %3755 }
 0x656   : > { %v1630_v62 = vpack.c.bf16 %v4835_v35, %v4832_v20  ;;  %v4857_v60 = vmul.f32 %v3756_v27, %v4776_v4 }
 0x657   : > { %v1769_v50 = vpack.c.bf16 %v4848_v33, %v4845_v52 }
 0x65b   : > { %3392 = vmatmul.mubr.msk.bf16.vlgmr.msra.gmra.mrb[28].mxu1 %vm1193_vm2, %v1494_v59  ;;  %v3662_v59 = vld [vmem:[%s4472_s6 + $0x38] sm:$0xff]  }
 0x65c   : > { %3402 = vmatpush3.bf16.msra.mxu1 %v1633_v56  ;;  %3403 = vmatprep.mubr.msk.bf16.mxu1 %vm4088_vm0, %v4087_v1 }
 0x65d   : > { %3413 = vmatprep.subr.bf16.mxu1 %v4087_v1 }
 0x663   : > { %3404 = vmatmul.mubr.msk.bf16.vlgmr.msra.gmra.mrb[32].mxu1 %vm1193_vm2, %v1630_v62 }
 0x664   : > { %3414 = vmatpush3.bf16.msra.mxu1 %v4626_v13  ;;  %3415 = vmatprep.mubr.msk.bf16.mxu1 %vm4088_vm0, %v4087_v1  ;;  %v3758_v13 = vpop.eup %3757 }
 0x665   : > { %3425 = vmatprep.subr.bf16.mxu1 %v4087_v1  ;;  %v4861_v58 = vmul.f32 %v3758_v13, %v4770_v54  ;;  %v3760_v14 = vpop.eup %3759 }
 0x666   : > { %v3762_v15 = vpop.eup %3761  ;;  %v4870_v4 = vmul.f32 %v3760_v14, %v4784_v11 }
 0x667   : > { %v1905_v10 = vpack.c.bf16 %v4857_v60, %v4861_v58  ;;  %v4874_v54 = vmul.f32 %v3762_v15, %v4780_v9 }
 0x668   : > { %v2161_v2 = vpop.xlane.xlu0 %2160 }
 0x669   : > { %3763 = vrcp.f32 %v2161_v2 }
 0x66b   : > { %3416 = vmatmul.mubr.msk.bf16.vlgmr.msra.gmra.mrb[36].mxu1 %vm1193_vm2, %v1769_v50 }
 0x66c   : > { %v1908_v6 = vpop.permute.xlu0 %1907  ;;  %3427 = vmatprep.mubr.msk.bf16.mxu1 %vm4088_vm0, %v4087_v1 }
 0x66d   : > { %3426 = vmatpush3.bf16.msra.mxu1 %v1908_v6 }
 0x66e   : > { %3437 = vmatprep.subr.bf16.mxu1 %v4087_v1 }
 0x673   : > { %3428 = vmatmul.mubr.msk.bf16.vlgmr.msra.gmra.mrb[40].mxu1 %vm1193_vm2, %v1905_v10  ;;  %v3764_v9 = vpop.eup %3763 }
 0x674   : > { %3438 = vmatpush3.bf16.msra.mxu1 %v4628_v16  ;;  %3439 = vmatprep.mubr.msk.bf16.mxu1 %vm4088_vm0, %v4087_v1  ;;  %v2044_v16 = vpack.c.bf16 %v4870_v4, %v4874_v54  ;;  %v4882_v5 = vmul.f32 %v3764_v9, %v4795_v29  ;;  %v3650_v29 = vld [vmem:[%s4472_s6 + $0x8] sm:$0xff]  }
 0x675   : > { %3449 = vmatprep.subr.bf16.mxu1 %v4087_v1 }
 0x678   : > { %v2164_v17 = vpop.xlane.xlu1 %2163 }
 0x679   : > { %3765 = vrcp.f32 %v2164_v17 }
 0x67b   : > { %3440 = vmatmul.mubr.msk.bf16.vlgmr.msra.gmra.mrb[44].mxu1 %vm1193_vm2, %v2044_v16 }
 0x67c   : > { %v2183_v18 = vpop.permute.xlu1 %2182  ;;  %3451 = vmatprep.mubr.msk.bf16.mxu1 %vm4088_vm0, %v4087_v1  ;;  %v3647_v1 = vld [vmem:[%s4472_s6 + $0x40] sm:$0xff]  }
 0x67d   : > { %3450 = vmatpush3.bf16.msra.mxu1 %v2183_v18  ;;  %3303 = vmatprep.subr.bf16.mxu0 %v3647_v1 }
 0x67e   : > { %3304 = vmatpush3.bf16.msra.mxu0 %v3648_v23 }
 0x67f   : > { %3305 = vmatprep.subr.bf16.mxu0 %v3649_v30 }
 0x682   : > { %3306 = vmatpush3.bf16.msra.mxu0 %v3650_v29 }
 0x683   : > { %v3766_v11 = vpop.eup %3765  ;;  %3307 = vmatprep.subr.bf16.mxu0 %v3651_v32 }
 0x684   : > { %v4885_v21 = vmul.f32 %v3766_v11, %v4799_v19  ;;  %v3652_v19 = vld [vmem:[%s4472_s6 + $0x10] sm:$0xff]  }
 0x686   : > { %v2180_v22 = vpack.c.bf16 %v4885_v21, %v4882_v5  ;;  %3308 = vmatpush3.bf16.msra.mxu0 %v3652_v19 }
 0x687   : > { %3309 = vmatprep.subr.bf16.mxu0 %v3653_v47 }
 0x688   : > { %3452 = vmatmul.mubr.msk.bf16.vlgmr.msra.gmra.mrb[48].mxu1 %vm1193_vm2, %v2180_v22 }
 0x689   : > { %2614 = vmatprep.mubr.bf16.mxu1 %v4086_v12 }
 0x68a   : > { %3310 = vmatpush3.bf16.msra.mxu0 %v3654_v0 }
 0x68b   : > { %3311 = vmatprep.subr.bf16.mxu0 %v3655_v34 }
 0x68e   : > { %3312 = vmatpush3.bf16.msra.mxu0 %v3656_v37 }
 0x68f   : > { %3313 = vmatprep.subr.bf16.mxu0 %v3657_v38 }
 0x692   : > { %3314 = vmatpush3.bf16.msra.mxu0 %v3658_v24 }
 0x693   : > { %3315 = vmatprep.subr.bf16.mxu0 %v3659_v51  ;;  %v3783_v51 = vld [vmem:[#allocation2] sm:$0xff] }
 0x696   : > { %3316 = vmatpush3.bf16.msra.mxu0 %v3660_v25 }
 0x697   : > { %3317 = vmatprep.subr.bf16.mxu0 %v3661_v28  ;;  %v3784_v28 = vld [vmem:[#allocation2 + $0x8] sm:$0xff] }
 0x69a   : > { %3318 = vmatpush3.bf16.msra.mxu0 %v3662_v59 }
 0x726   : > { %v1396_v39 = vpop.f32.mrb[24].mxu1 }
 0x727   : > { %v3381_v40 = vpop.f32.mrb[25].mxu1 }
 0x728   : > { %v1399_v26 = vpop.f32.mrb[26].mxu1 }
 0x729   : > { %v1403_v41 = vpack.c.bf16 %v1399_v26, %v1396_v39  ;;  %v3382_v42 = vpop.f32.mrb[27].mxu1 }
 0x72a   : > { %v3211_v42 = vld [vmem:[%s629_s8] ss:$0 sm:$0xff] }
 0x72e   : > { %v1533_v44 = vpop.f32.mrb[28].mxu1 }
 0x72f   : > { %v3393_v43 = vpop.f32.mrb[29].mxu1 }
 0x730   : > { %v1536_v55 = vpop.f32.mrb[30].mxu1 }
 0x731   : > { %v1540_v46 = vpack.c.bf16 %v1536_v55, %v1533_v44  ;;  %v3394_v48 = vpop.f32.mrb[31].mxu1 }
 0x733   : > { %1541 = vst.msk [vmem:[#allocation3 + $0x8] sm:$0xff] %vm1143_vm1, %v1540_v46 }
 0x736   : > { %v1672_v57 = vpop.f32.mrb[32].mxu1 }
 0x737   : > { %v3405_v61 = vpop.f32.mrb[33].mxu1 }
 0x738   : > { %v1675_v56 = vpop.f32.mrb[34].mxu1 }
 0x739   : > { %v1679_v45 = vpack.c.bf16 %v1675_v56, %v1672_v57  ;;  %v3406_v62 = vpop.f32.mrb[35].mxu1 }
 0x73b   : > { %1681 = vrot.lane.b32.xlu0 %v1679_v45, %s4089_s17 }
 0x73e   : > { %v1808_v63 = vpop.f32.mrb[36].mxu1 }
 0x73f   : > { %1405 = vrot.lane.b32.xlu0 %v1403_v41, %s4089_s17  ;;  %v3417_v2 = vpop.f32.mrb[37].mxu1 }
 0x740   : > { %v1811_v50 = vpop.f32.mrb[38].mxu1 }
 0x741   : > { %v1815_v27 = vpack.c.bf16 %v1811_v50, %v1808_v63  ;;  %v3418_v13 = vpop.f32.mrb[39].mxu1 }
 0x743   : > { %1816 = vst.msk [vmem:[#allocation3 + $0x10] sm:$0xff] %vm1143_vm1, %v1815_v27  ;;  %v3785_v27 = vld [vmem:[#allocation2 + $0x10] sm:$0xff] }
 0x746   : > { %v1947_v6 = vpop.f32.mrb[40].mxu1 }
 0x747   : > { %v3429_v10 = vpop.f32.mrb[41].mxu1 }
 0x748   : > { %v1950_v14 = vpop.f32.mrb[42].mxu1 }
 0x749   : > { %v1954_v15 = vpack.c.bf16 %v1950_v14, %v1947_v6  ;;  %v3430_v17 = vpop.f32.mrb[43].mxu1  ;;  %v3786_v6 = vld [vmem:[#allocation2 + $0x18] sm:$0xff]  ;;  %v3663_v14 = vld [vmem:[%s4474_s15] ss:$8 sps:$4 sm:$0xff]  }
 0x74a   : > { %v3668_v17 = vld [vmem:[%s4474_s15 + $0x14] ss:$8 sps:$4 sm:$0xff]  }
 0x74b   : > { %1956 = vrot.lane.b32.xlu1 %v1954_v15, %s4089_s17  ;;  %v3665_v15 = vld [vmem:[%s4474_s15 + $0x4] ss:$8 sps:$4 sm:$0xff]  }
 0x74c   : > { %2582 = vmatprep.subr.bf16.mxu1 %v3665_v15 }
 0x74d   : > { %2583 = vmatpush1.bf16.msra.mxu1 %v3663_v14 }
 0x74e   : > { %v2083_v16 = vpop.f32.mrb[44].mxu1  ;;  %2584 = vmatprep.subr.bf16.mxu1 %v3668_v17 }
 0x74f   : > { %v3441_v18 = vpop.f32.mrb[45].mxu1 }
 0x750   : > { %v2086_v9 = vpop.f32.mrb[46].mxu1  ;;  %v3671_v18 = vld [vmem:[%s4474_s15 + $0x24] ss:$8 sps:$4 sm:$0xff]  }
 0x751   : > { %v2090_v11 = vpack.c.bf16 %v2086_v9, %v2083_v16  ;;  %v3442_v22 = vpop.f32.mrb[47].mxu1  ;;  %v3666_v16 = vld [vmem:[%s4474_s15 + $0x10] ss:$8 sps:$4 sm:$0xff]   ;;  %v3669_v9 = vld [vmem:[%s4474_s15 + $0x20] ss:$8 sps:$4 sm:$0xff]  }
 0x752   : > { %2585 = vmatpush1.bf16.msra.mxu1 %v3666_v16 }
 0x753   : > { %2091 = vst.msk [vmem:[#allocation3 + $0x18] sm:$0xff] %vm1143_vm1, %v2090_v11  ;;  %2586 = vmatprep.subr.bf16.mxu1 %v3671_v18 }
 0x756   : > { %2587 = vmatpush1.bf16.msra.mxu1 %v3669_v9 }
 0x75b   : > { %v2222_v1 = vpop.f32.mrb[48].mxu1 }
 0x75c   : > { %v3453_v23 = vpop.f32.mrb[49].mxu1 }
 0x75d   : > { %v2225_v30 = vpop.f32.mrb[50].mxu1 }
 0x75e   : > { %v2229_v29 = vpack.c.bf16 %v2225_v30, %v2222_v1  ;;  %v3454_v32 = vpop.f32.mrb[51].mxu1 }
 0x760   : > { %2231 = vrot.lane.b32.xlu0 %v2229_v29, %s4089_s17 }
 0x7ad   : > { %v1682_v19 = vpop.permute.xlu0 %1681 }
 0x7ae   : > { %1684 = vst.msk [vmem:[#allocation3 + $0x8] sm:$0xff] %vm1408_vm3, %v1682_v19 }
 0x7b1   : > { %v1406_v47 = vpop.permute.xlu0 %1405 }
 0x7b2   : > { %1409 = vst.msk [vmem:[#allocation3] sm:$0xff] %vm1408_vm3, %v1406_v47  ;;  %v3674_v47 = vld [vmem:[%s4474_s15 + $0x34] ss:$8 sps:$4 sm:$0xff]  }
 0x7b3   : > { %2588 = vmatprep.subr.bf16.mxu1 %v3674_v47 }
 0x7b5   : > { %v2236_v0 = vld [vmem:[#allocation3 + $0x8] sm:$0xff] }
 0x7b6   : > { %2406 = vmatprep.mubr.bf16.mxu0 %v2236_v0  ;;  %v3672_v0 = vld [vmem:[%s4474_s15 + $0x30] ss:$8 sps:$4 sm:$0xff]  }
 0x7b7   : > { %2589 = vmatpush1.bf16.msra.mxu1 %v3672_v0 }
 0x7b9   : > { %v2235_v34 = vld [vmem:[#allocation3] sm:$0xff] }
 0x7ba   : > { %2407 = vmatmul.mubr.bf16.vlgmr.msra.gmra.mrb[36].mxu0 %v2235_v34  ;;  %v3677_v34 = vld [vmem:[%s4474_s15 + $0x44] ss:$8 sps:$4 sm:$0xff]  }
 0x7bb   : > { %2590 = vmatprep.subr.bf16.mxu1 %v3677_v34 }
 0x7bd   : > { %v1957_v37 = vpop.permute.xlu1 %1956 }
 0x7be   : > { %1959 = vst.msk [vmem:[#allocation3 + $0x10] sm:$0xff] %vm1408_vm3, %v1957_v37  ;;  %v3675_v37 = vld [vmem:[%s4474_s15 + $0x40] ss:$8 sps:$4 sm:$0xff]  }
 0x7bf   : > { %2591 = vmatpush1.bf16.msra.mxu1 %v3675_v37 }
 0x7c5   : > { %v2237_v26 = vld [vmem:[#allocation3 + $0x10] sm:$0xff] }
 0x7d2   : > { %v2232_v39 = vpop.permute.xlu0 %2231 }
 0x7d3   : > { %2234 = vst.msk [vmem:[#allocation3 + $0x18] sm:$0xff] %vm1408_vm3, %v2232_v39  ;;  %v3680_v39 = vld [vmem:[%s4474_s15 + $0x54] ss:$8 sps:$4 sm:$0xff]  }
 0x7d4   : > { %2592 = vmatprep.subr.bf16.mxu1 %v3680_v39  ;;  %v3698_v39 = vld [vmem:[%s4483_s16 + $0x28] sm:$0xff]  }
 0x7da   : > { %v2238_v40 = vld [vmem:[#allocation3 + $0x18] sm:$0xff] }
 0x7db   : > { %2414 = vmatprep.mubr.bf16.mxu0 %v2238_v40  ;;  %v3678_v40 = vld [vmem:[%s4474_s15 + $0x50] ss:$8 sps:$4 sm:$0xff]  }
 0x7dc   : > { %2415 = vmatmul.mubr.bf16.gmra.mrb[40].mxu0 %v2237_v26  ;;  %v3683_v26 = vld [vmem:[%s4474_s15 + $0x64] ss:$8 sps:$4 sm:$0xff]   ;;  %2593 = vmatpush1.bf16.msra.mxu1 %v3678_v40  ;;  %v3699_v40 = vld [vmem:[%s4483_s16 + $0x70] sm:$0xff]  }
 0x7dd   : > { %2594 = vmatprep.subr.bf16.mxu1 %v3683_v26  ;;  %v3700_v26 = vld [vmem:[%s4483_s16 + $0x30] sm:$0xff]  }
 0x88d   : > { %v3319_v41 = vpop.f32.mrb[36].mxu0 }
 0x88e   : > { %v3320_v38 = vpop.f32.mrb[37].mxu0 }
 0x88f   : > { %v3321_v44 = vadd.f32 %v3320_v38, %v3319_v41  ;;  %v3322_v24 = vpop.f32.mrb[38].mxu0  ;;  %v3681_v41 = vld [vmem:[%s4474_s15 + $0x60] ss:$8 sps:$4 sm:$0xff]  }
 0x890   : > { %v3323_v43 = vpop.f32.mrb[39].mxu0  ;;  %2595 = vmatpush1.bf16.msra.mxu1 %v3681_v41  ;;  %v3701_v41 = vld [vmem:[%s4483_s16 + $0x78] sm:$0xff]  }
 0x891   : > { %v2409_v55 = vadd.f32 %v3321_v44, %v3211_v42  ;;  %v3324_v46 = vadd.f32 %v3323_v43, %v3322_v24  ;;  %v3684_v24 = vld [vmem:[%s4474_s15 + $0x70] ss:$8 sps:$4 sm:$0xff]  }
 0x893   : > { %v2412_v48 = vadd.f32 %v3324_v46, %v3211_v42  ;;  %v2423_v25 = vadd.f32 %v3783_v51, %v2409_v55 }
 0x895   : > { %2427 = vadd.xlane.f32.xlu0 %v2423_v25  ;;  %v2424_v57 = vadd.f32 %v3784_v28, %v2412_v48  ;;  %v3687_v28 = vld [vmem:[%s4483_s16 + $0x40] sm:$0xff]  }
 0x896   : > { %3331 = vmatprep.subr.bf16.mxu0 %v3687_v28 }
 0x897   : > { %2429 = vadd.xlane.f32.xlu1 %v2424_v57 }
 0x8af   : > { %v3325_v59 = vpop.f32.mrb[40].mxu0 }
 0x8b0   : > { %v3326_v61 = vpop.f32.mrb[41].mxu0 }
 0x8b1   : > { %v3327_v56 = vadd.f32 %v3326_v61, %v3325_v59  ;;  %v3328_v45 = vpop.f32.mrb[42].mxu0  ;;  %v3689_v59 = vld [vmem:[%s4483_s16 + $0x48] sm:$0xff]  }
 0x8b2   : > { %v3329_v62 = vpop.f32.mrb[43].mxu0  ;;  %v3690_v61 = vld [vmem:[%s4483_s16 + $0x8] sm:$0xff]  }
 0x8b3   : > { %v2417_v63 = vadd.f32 %v3327_v56, %v3211_v42  ;;  %v3330_v2 = vadd.f32 %v3329_v62, %v3328_v45  ;;  %v3691_v56 = vld [vmem:[%s4483_s16 + $0x50] sm:$0xff]   ;;  %v3693_v62 = vld [vmem:[%s4483_s16 + $0x58] sm:$0xff]  }
 0x8b4   : > { %v3692_v45 = vld [vmem:[%s4483_s16 + $0x10] sm:$0xff]  }
 0x8b5   : > { %v2420_v50 = vadd.f32 %v3330_v2, %v3211_v42  ;;  %v2425_v13 = vadd.f32 %v3785_v27, %v2417_v63  ;;  %v3686_v42 = vld [vmem:[%s4474_s15 + $0x74] ss:$8 sps:$4 sm:$0xff]   ;;  %v3695_v2 = vld [vmem:[%s4483_s16 + $0x60] sm:$0xff]   ;;  %v3697_v27 = vld [vmem:[%s4483_s16 + $0x68] sm:$0xff]   ;;  %s4091_s15 = smov 32  }
 0x8b6   : > { %2596 = vmatprep.subr.bf16.mxu1 %v3686_v42  ;;  %v3694_v63 = vld [vmem:[%s4483_s16 + $0x18] sm:$0xff]  }
 0x8b7   : > { %2431 = vadd.xlane.f32.xlu0 %v2425_v13  ;;  %v2426_v10 = vadd.f32 %v3786_v6, %v2420_v50  ;;  %2597 = vmatpush1.bf16.msra.mxu1 %v3684_v24  ;;  %v3696_v50 = vld [vmem:[%s4483_s16 + $0x20] sm:$0xff]   ;;  %v3702_v42 = vld [vmem:[%s4483_s16 + $0x38] sm:$0xff]  }
 0x8bb   : > { %2433 = vadd.xlane.f32.xlu0 %v2426_v10 }
 0x922   : > { %v2428_v11 = vpop.xlane.xlu0 %2427 }
 0x923   : > { %v2436_v22 = vmul.f32 0.0078125, %v2428_v11 }
 0x924   : > { %v2430_v1 = vpop.xlane.xlu1 %2429 }
 0x925   : > { %v4925_v23 = vsub.f32 %v2423_v25, %v2436_v22  ;;  %v2437_v30 = vmul.f32 0.0078125, %v2430_v1 }
 0x927   : > { %v4927_v29 = vsub.f32 %v2424_v57, %v2437_v30  ;;  %v2444_v32 = vmul.f32 %v4925_v23, %v4925_v23  ;;  %v3688_v57 = vld [vmem:[%s4483_s16] sm:$0xff]   ;;  %s4093_s16 = smov 80  }
 0x928   : > { %3332 = vmatpush3.bf16.msra.mxu0 %v3688_v57 }
 0x929   : > { %2448 = vadd.xlane.f32.xlu0 %v2444_v32  ;;  %v2445_v19 = vmul.f32 %v4927_v29, %v4927_v29  ;;  %3333 = vmatprep.subr.bf16.mxu0 %v3689_v59 }
 0x92b   : > { %2450 = vadd.xlane.f32.xlu1 %v2445_v19 }
 0x92c   : > { %3334 = vmatpush3.bf16.msra.mxu0 %v3690_v61 }
 0x92d   : > { %3335 = vmatprep.subr.bf16.mxu0 %v3691_v56 }
 0x930   : > { %3336 = vmatpush3.bf16.msra.mxu0 %v3692_v45 }
 0x931   : > { %3337 = vmatprep.subr.bf16.mxu0 %v3693_v62 }
 0x934   : > { %3338 = vmatpush3.bf16.msra.mxu0 %v3694_v63 }
 0x935   : > { %3339 = vmatprep.subr.bf16.mxu0 %v3695_v2 }
 0x938   : > { %3340 = vmatpush3.bf16.msra.mxu0 %v3696_v50 }
 0x939   : > { %3341 = vmatprep.subr.bf16.mxu0 %v3697_v27 }
 0x93c   : > { %3342 = vmatpush3.bf16.msra.mxu0 %v3698_v39 }
 0x93d   : > { %3343 = vmatprep.subr.bf16.mxu0 %v3699_v40 }
 0x940   : > { %3344 = vmatpush3.bf16.msra.mxu0 %v3700_v26 }
 0x941   : > { %3345 = vmatprep.subr.bf16.mxu0 %v3701_v41 }
 0x944   : > { %v2432_v38 = vpop.xlane.xlu0 %2431  ;;  %3346 = vmatpush3.bf16.msra.mxu0 %v3702_v42 }
 0x945   : > { %v2438_v44 = vmul.f32 0.0078125, %v2432_v38  ;;  %v2490_v38 = vld [vmem:[%s4481_s13] sm:$0x3]  ;;  %s4092_s13 = smov 48  }
 0x946   : > { %v2499_v24 = vrot.slane %v2490_v38, %v718_v8 }
 0x947   : > { %v2442_v43 = vsub.f32 %v2425_v13, %v2438_v44  ;;  %v2495_v44 = vrot.slane %v2490_v38, %v714_v7 }
 0x948   : > { %v2434_v55 = vpop.xlane.xlu0 %2433 }
 0x949   : > { %v2439_v46 = vmul.f32 0.0078125, %v2434_v55  ;;  %v2446_v48 = vmul.f32 %v2442_v43, %v2442_v43 }
 0x94b   : > { %v2443_v51 = vsub.f32 %v2426_v10, %v2439_v46  ;;  %2452 = vadd.xlane.f32.xlu0 %v2446_v48 }
 0x94d   : > { %v2447_v25 = vmul.f32 %v2443_v51, %v2443_v51 }
 0x94f   : > { %2454 = vadd.xlane.f32.xlu1 %v2447_v25 }
 0x9b6   : > { %v2449_v13 = vpop.xlane.xlu0 %2448 }
 0x9b7   : > { %v2456_v6 = vmul.f32 0.0078125, %v2449_v13 }
 0x9b8   : > { %v2451_v10 = vpop.xlane.xlu1 %2450 }
 0x9b9   : > { %v2460_v14 = vadd.f32 1e-05, %v2456_v6  ;;  %v2457_v15 = vmul.f32 0.0078125, %v2451_v10 }
 0x9bb   : > { %3767 = vrsqrt.f32 %v2460_v14  ;;  %v2461_v17 = vadd.f32 1e-05, %v2457_v15 }
 0x9bd   : > { %3769 = vrsqrt.f32 %v2461_v17 }
 0x9c5   : > { %v3768_v16 = vpop.eup %3767 }
 0x9c6   : > { %v4955_v9 = vmul.f32 %v3768_v16, %v4925_v23 }
 0x9c7   : > { %v3770_v18 = vpop.eup %3769 }
 0x9c8   : > { %v4958_v11 = vmul.f32 %v3770_v18, %v4927_v29 }
 0x9ca   : > { %v2472_v22 = vpack.c.bf16 %v4958_v11, %v4955_v9 }
 0x9cc   : > { %2615 = vmatmul.mubr.bf16.vlgmr.msra.gmra.mrb[52].mxu1 %v2472_v22 }
 0x9cd   : > { %2624 = vmatprep.mubr.bf16.mxu1 %v4086_v12 }
 0x9d8   : > { %v2453_v1 = vpop.xlane.xlu0 %2452 }
 0x9d9   : > { %v2458_v30 = vmul.f32 0.0078125, %v2453_v1  ;;  %v3244_v1 = vld [vmem:[%s553_s22] ss:$0 sm:$0xff] }
 0x9db   : > { %v2462_v32 = vadd.f32 1e-05, %v2458_v30 }
 0x9dc   : > { %v2455_v19 = vpop.xlane.xlu1 %2454 }
 0x9dd   : > { %v2459_v47 = vmul.f32 0.0078125, %v2455_v19  ;;  %3771 = vrsqrt.f32 %v2462_v32 }
 0x9df   : > { %v2463_v23 = vadd.f32 1e-05, %v2459_v47 }
 0x9e1   : > { %3773 = vrsqrt.f32 %v2463_v23 }
 0x9e7   : > { %v3772_v29 = vpop.eup %3771 }
 0x9e8   : > { %v4963_v34 = vmul.f32 %v3772_v29, %v2442_v43 }
 0x9eb   : > { %v3774_v0 = vpop.eup %3773 }
 0x9ec   : > { %v4965_v37 = vmul.f32 %v3774_v0, %v2443_v51 }
 0x9ee   : > { %v2473_v12 = vpack.c.bf16 %v4965_v37, %v4963_v34 }
 0x9f0   : > { %2625 = vmatmul.mubr.bf16.gmra.mrb[56].mxu1 %v2473_v12 }
 0xa9f   : > { %v2616_v43 = vpop.f32.mrb[52].mxu1 }
 0xaa0   : > { %v2617_v55 = vadd.f32 %v2616_v43, %v2495_v44  ;;  %v2618_v46 = vpop.f32.mrb[53].mxu1 }
 0xaa1   : > { %v2619_v48 = vadd.f32 %v2618_v46, %v2499_v24  ;;  %v2620_v51 = vpop.f32.mrb[54].mxu1 }
 0xaa2   : > { %v2621_v25 = vadd.f32 %v2620_v51, %v2495_v44  ;;  %v2622_v28 = vpop.f32.mrb[55].mxu1  ;;  %v2635_v59 = vmax.f32 %v2617_v55, 0.0 }
 0xaa3   : > { %v2623_v57 = vadd.f32 %v2622_v28, %v2499_v24  ;;  %v2636_v56 = vmax.f32 %v2619_v48, 0.0 }
 0xaa4   : > { %v2637_v61 = vmax.f32 %v2621_v25, 0.0 }
 0xaa5   : > { %v2638_v45 = vmax.f32 %v2623_v57, 0.0 }
 0xaa6   : > { %v2643_v62 = vpack.c.bf16 %v2637_v61, %v2635_v59 }
 0xaa7   : > { %v2644_v63 = vpack.c.bf16 %v2638_v45, %v2636_v56 }
 0xaa9   : > { %2814 = vmatprep.mubr.bf16.mxu0 %v2644_v63 }
 0xaaa   : > { %2815 = vmatmul.mubr.bf16.vlgmr.msra.gmra.mrb[44].mxu0 %v2643_v62 }
 0xac3   : > { %v2626_v7 = vpop.f32.mrb[56].mxu1 }
 0xac4   : > { %v2627_v2 = vadd.f32 %v2626_v7, %v2495_v44  ;;  %v2628_v3 = vpop.f32.mrb[57].mxu1 }
 0xac5   : > { %v2629_v8 = vadd.f32 %v2628_v3, %v2499_v24  ;;  %v2630_v50 = vpop.f32.mrb[58].mxu1 }
 0xac6   : > { %v2631_v27 = vadd.f32 %v2630_v50, %v2495_v44  ;;  %v2632_v13 = vpop.f32.mrb[59].mxu1  ;;  %v2639_v10 = vmax.f32 %v2627_v2, 0.0 }
 0xac7   : > { %v2633_v6 = vadd.f32 %v2632_v13, %v2499_v24  ;;  %v2640_v15 = vmax.f32 %v2629_v8, 0.0 }
 0xac8   : > { %v2641_v14 = vmax.f32 %v2631_v27, 0.0 }
 0xac9   : > { %v2642_v17 = vmax.f32 %v2633_v6, 0.0 }
 0xaca   : > { %v2645_v16 = vpack.c.bf16 %v2641_v14, %v2639_v10 }
 0xacb   : > { %v2646_v18 = vpack.c.bf16 %v2642_v17, %v2640_v15 }
 0xacd   : > { %2822 = vmatprep.mubr.bf16.mxu0 %v2646_v18 }
 0xace   : > { %2823 = vmatmul.mubr.bf16.gmra.mrb[48].mxu0 %v2645_v16 }
 0xb7d   : > { %v3347_v22 = vpop.f32.mrb[44].mxu0 }
 0xb7e   : > { %v3348_v30 = vpop.f32.mrb[45].mxu0 }
 0xb7f   : > { %v3349_v32 = vadd.f32 %v3348_v30, %v3347_v22  ;;  %v3350_v19 = vpop.f32.mrb[46].mxu0 }
 0xb80   : > { %v3351_v47 = vpop.f32.mrb[47].mxu0 }
 0xb81   : > { %v2817_v23 = vadd.f32 %v3349_v32, %v3244_v1  ;;  %v3352_v29 = vadd.f32 %v3351_v47, %v3350_v19 }
 0xb83   : > { %v2820_v0 = vadd.f32 %v3352_v29, %v3244_v1  ;;  %v2831_v12 = vadd.f32 %v2817_v23, %v4955_v9 }
 0xb85   : > { %2835 = vadd.xlane.f32.xlu0 %v2831_v12  ;;  %v2832_v39 = vadd.f32 %v2820_v0, %v4958_v11 }
 0xb87   : > { %2837 = vadd.xlane.f32.xlu1 %v2832_v39 }
 0xba1   : > { %v3353_v40 = vpop.f32.mrb[48].mxu0 }
 0xba2   : > { %v3354_v26 = vpop.f32.mrb[49].mxu0 }
 0xba3   : > { %v3355_v41 = vadd.f32 %v3354_v26, %v3353_v40  ;;  %v3356_v42 = vpop.f32.mrb[50].mxu0 }
 0xba4   : > { %v3357_v38 = vpop.f32.mrb[51].mxu0 }
 0xba5   : > { %v2825_v44 = vadd.f32 %v3355_v41, %v3244_v1  ;;  %v3358_v24 = vadd.f32 %v3357_v38, %v3356_v42 }
 0xba7   : > { %v2828_v43 = vadd.f32 %v3358_v24, %v3244_v1  ;;  %v2833_v55 = vadd.f32 %v2825_v44, %v4963_v34 }
 0xba9   : > { %2839 = vadd.xlane.f32.xlu0 %v2833_v55  ;;  %v2834_v46 = vadd.f32 %v2828_v43, %v4965_v37 }
 0xbab   : > { %2841 = vadd.xlane.f32.xlu1 %v2834_v46 }
 0xbbc   : > { %1347 = vrot.lane.b32.xlu1 %v4811_v49, %s4090_s29 }
 0xbbf   : > { %1345 = vrot.lane.b32.xlu0 %v4809_v31, %s4090_s29 }
 0xbc0   : > { %1485 = vrot.lane.b32.xlu1 %v4824_v53, %s4091_s15 }
 0xbc3   : > { %1621 = vrot.lane.b32.xlu0 %v4832_v20, %s4092_s13 }
 0xbc4   : > { %1487 = vrot.lane.b32.xlu1 %v4820_v36, %s4091_s15 }
 0xbc7   : > { %1760 = vrot.lane.b32.xlu0 %v4845_v52, %s4089_s17 }
 0xbc8   : > { %1623 = vrot.lane.b32.xlu1 %v4835_v35, %s4092_s13 }
 0xbcb   : > { %1896 = vrot.lane.b32.xlu0 %v4861_v58, %s4093_s16 }
 0xbcc   : > { %1762 = vrot.lane.b32.xlu1 %v4848_v33, %s4089_s17 }
 0xbcf   : > { %2035 = vrot.lane.b32.xlu0 %v4874_v54, %s4094_s20 }
 0xbd0   : > { %1898 = vrot.lane.b32.xlu1 %v4857_v60, %s4093_s16 }
 0xbd3   : > { %2171 = vrot.lane.b32.xlu0 %v4882_v5, %s4095_s26 }
 0xbd4   : > { %2037 = vrot.lane.b32.xlu1 %v4870_v4, %s4094_s20 }
 0xbd8   : > { %2173 = vrot.lane.b32.xlu1 %v4885_v21, %s4095_s26 }
 0xc12   : > { %v2836_v31 = vpop.xlane.xlu0 %2835 }
 0xc13   : > { %v2843_v49 = vmul.f32 0.0078125, %v2836_v31 }
 0xc14   : > { %v2838_v36 = vpop.xlane.xlu1 %2837 }
 0xc15   : > { %v2847_v53 = vsub.f32 %v2831_v12, %v2843_v49  ;;  %v2844_v20 = vmul.f32 0.0078125, %v2838_v36 }
 0xc17   : > { %v2848_v35 = vsub.f32 %v2832_v39, %v2844_v20  ;;  %v2851_v52 = vmul.f32 %v2847_v53, %v2847_v53 }
 0xc19   : > { %2855 = vadd.xlane.f32.xlu0 %v2851_v52  ;;  %v2852_v33 = vmul.f32 %v2848_v35, %v2848_v35 }
 0xc1b   : > { %2857 = vadd.xlane.f32.xlu1 %v2852_v33 }
 0xc36   : > { %v2840_v60 = vpop.xlane.xlu0 %2839 }
 0xc37   : > { %v2845_v58 = vmul.f32 0.0078125, %v2840_v60 }
 0xc38   : > { %v2842_v54 = vpop.xlane.xlu1 %2841 }
 0xc39   : > { %v5001_v4 = vsub.f32 %v2833_v55, %v2845_v58  ;;  %v2846_v5 = vmul.f32 0.0078125, %v2842_v54 }
 0xc3a   : > { %v1346_v21 = vpop.permute.xlu0 %1345 }
 0xc3b   : > { %v5003_v9 = vsub.f32 %v2834_v46, %v2846_v5  ;;  %1352 = vst.msk [vmem:[%s4507_s25] sm:$0xff] %vm1351_vm4, %v1346_v21  ;;  %v2853_v11 = vmul.f32 %v5001_v4, %v5001_v4 }
 0xc3c   : > { %v1348_v34 = vpop.permute.xlu1 %1347 }
 0xc3d   : > { %1353 = vst.msk [vmem:[%s4507_s25 + $0x8] sm:$0xff] %vm1351_vm4, %v1348_v34  ;;  %2859 = vadd.xlane.f32.xlu0 %v2853_v11  ;;  %v2854_v48 = vmul.f32 %v5003_v9, %v5003_v9 }
 0xc3e   : > { %v1622_v37 = vpop.permute.xlu0 %1621 }
 0xc40   : > { %v1486_v51 = vpop.permute.xlu1 %1485 }
 0xc41   : > { %1492 = vst.msk [vmem:[%s4507_s25] sm:$0xff] %vm1491_vm5, %v1486_v51  ;;  %2861 = vadd.xlane.f32.xlu0 %v2854_v48 }
 0xc42   : > { %1628 = vst.msk [vmem:[%s4507_s25] sm:$0xff] %vm1627_vm6, %v1622_v37  ;;  %v1761_v25 = vpop.permute.xlu0 %1760 }
 0xc43   : > { %1767 = vst.msk [vmem:[%s4507_s25] sm:$0xff] %vm1766_vm7, %v1761_v25 }
 0xc44   : > { %v1488_v28 = vpop.permute.xlu1 %1487 }
 0xc45   : > { %1493 = vst.msk [vmem:[%s4507_s25 + $0x8] sm:$0xff] %vm1491_vm5, %v1488_v28 }
 0xc46   : > { %v1897_v57 = vpop.permute.xlu0 %1896 }
 0xc47   : > { %1903 = vst.msk [vmem:[%s4507_s25] sm:$0xff] %vm1902_vm8, %v1897_v57 }
 0xc48   : > { %v1624_v59 = vpop.permute.xlu1 %1623 }
 0xc49   : > { %1629 = vst.msk [vmem:[%s4507_s25 + $0x8] sm:$0xff] %vm1627_vm6, %v1624_v59 }
 0xc4a   : > { %v2036_v61 = vpop.permute.xlu0 %2035 }
 0xc4b   : > { %2042 = vst.msk [vmem:[%s4507_s25] sm:$0xff] %vm2041_vm9, %v2036_v61 }
 0xc4c   : > { %v1763_v56 = vpop.permute.xlu1 %1762 }
 0xc4d   : > { %1768 = vst.msk [vmem:[%s4507_s25 + $0x8] sm:$0xff] %vm1766_vm7, %v1763_v56 }
 0xc4e   : > { %v2172_v45 = vpop.permute.xlu0 %2171 }
 0xc4f   : > { %2178 = vst.msk [vmem:[%s4507_s25] sm:$0xff] %vm2177_vm10, %v2172_v45 }
 0xc50   : > { %v1899_v62 = vpop.permute.xlu1 %1898 }
 0xc51   : > { %1904 = vst.msk [vmem:[%s4507_s25 + $0x8] sm:$0xff] %vm1902_vm8, %v1899_v62 }
 0xc54   : > { %v2038_v63 = vpop.permute.xlu1 %2037 }
 0xc55   : > { %2043 = vst.msk [vmem:[%s4507_s25 + $0x8] sm:$0xff] %vm2041_vm9, %v2038_v63 }
 0xc58   : > { %v2174_v7 = vpop.permute.xlu1 %2173 }
 0xc59   : > { %2179 = vst.msk [vmem:[%s4507_s25 + $0x8] sm:$0xff] %vm2177_vm10, %v2174_v7 }
 0xca6   : > { %v2856_v2 = vpop.xlane.xlu0 %2855 }
 0xca7   : > { %v2863_v3 = vmul.f32 0.0078125, %v2856_v2 }
 0xca8   : > { %v2858_v8 = vpop.xlane.xlu1 %2857 }
 0xca9   : > { %v2867_v50 = vadd.f32 1e-05, %v2863_v3  ;;  %v2864_v27 = vmul.f32 0.0078125, %v2858_v8 }
 0xcab   : > { %3775 = vrsqrt.f32 %v2867_v50  ;;  %v2868_v13 = vadd.f32 1e-05, %v2864_v27 }
 0xcad   : > { %3777 = vrsqrt.f32 %v2868_v13 }
 0xcb5   : > { %v3776_v6 = vpop.eup %3775 }
 0xcb6   : > { %v2875_v10 = vmul.f32 %v3776_v6, %v2847_v53 }
 0xcb7   : > { %v3778_v14 = vpop.eup %3777 }
 0xcb8   : > { %2879 = vst [vmem:[#allocation2] sm:$0xff] %v2875_v10  ;;  %v2876_v15 = vmul.f32 %v3778_v14, %v2848_v35  ;;  %2887 = vst [vmem:[#allocation16] sm:$0xff] (!%p3261_p10), %v2875_v10 }
 0xcba   : > { %2880 = vst [vmem:[#allocation2 + $0x8] sm:$0xff] %v2876_v15  ;;  %2888 = vst [vmem:[#allocation16 + $0x8] sm:$0xff] (!%p3261_p10), %v2876_v15 }
 0xcca   : > { %v2860_v17 = vpop.xlane.xlu0 %2859 }
 0xccb   : > { %v2865_v16 = vmul.f32 0.0078125, %v2860_v17 }
 0xccd   : > { %v2869_v18 = vadd.f32 1e-05, %v2865_v16 }
 0xcce   : > { %v2862_v22 = vpop.xlane.xlu0 %2861 }
 0xccf   : > { %3779 = vrsqrt.f32 %v2869_v18  ;;  %v2866_v1 = vmul.f32 0.0078125, %v2862_v22 }
 0xcd1   : > { %v2870_v30 = vadd.f32 1e-05, %v2866_v1 }
 0xcd3   : > { %3781 = vrsqrt.f32 %v2870_v30 }
 0xcd9   : > { %v3780_v32 = vpop.eup %3779 }
 0xcda   : > { %v2877_v19 = vmul.f32 %v3780_v32, %v5001_v4  ;;  %2886 = sbr.rel (%p3261_p10) target bundleno = 3297 (0xce1), region = 96 }
 0xcdc   : > { %2881 = vst [vmem:[#allocation2 + $0x10] sm:$0xff] %v2877_v19  ;;  %2889 = vst [vmem:[#allocation16 + $0x10] sm:$0xff] (!%p3261_p10), %v2877_v19 }
 0xcdd   : > { %v3782_v47 = vpop.eup %3781 }
 0xcde   : > { %v2878_v23 = vmul.f32 %v3782_v47, %v5003_v9 }
 0xce0   : > { %2882 = vst [vmem:[#allocation2 + $0x18] sm:$0xff] %v2878_v23  ;;  %2890 = vst [vmem:[#allocation16 + $0x18] sm:$0xff] (!%p3261_p10), %v2878_v23 }
 0xce1 PF: > { %p3521_p5 = scmp.eq.s32.totalorder %s4320_s24, 1  ;;  %s4096_s8 = smov [#allocation16]  }
 0xce2   : > { %s2902_s30 = sshll.u32 %s4096_s8, 4  ;;  %s2903_s30 = int_to_ptr.vmem [resolvable:$true] %s2902_s30 }
 0xce3   : > { %s3995_s19 = scalar_lea.vmem %s2903_s30, 512  ;;  %p4002_p13 = scmp.lt.s32.totalorder %s2903_s30, %s2903_s30 }
 0xce4   : > { %p3996_p8 = scmp.ne.s32.totalorder %s2903_s30, %s3995_s19  ;;  %p4003_p1 = scmp.lt.s32.totalorder %s3995_s19, %s3995_s19 }
 0xce6   : > { %p3997_p0 = pnand %p3996_p8, %p3521_p5  ;;  %p4004_p11 = por %p4003_p1, %p4002_p13 }
 0xce8   : > { %p3998_p12 = pneg %p3997_p0 }
 0xcea   : > { %p4005_p6 = pnand %p4004_p11, %p3998_p12 }
 0xcec   : > { %4008 = shalt.err (!%p4005_p6)
}
 0xced   : > { %s5129_s23 = sld [smem:[#allocation29_spill]] }
 0xcf3   : > { %s4009_s28 = scalar_lea.hbm %s5129_s23, 512 }
 0xcf4   : > { %p4010_p7 = scmp.ne.s32.totalorder %s5129_s23, %s4009_s28  ;;  %p4015_p4 = scmp.lt.u32.totalorder %s4009_s28, %s5129_s23 }
 0xcf6   : > { %p4011_p2 = pnand %p4010_p7, %p3521_p5 }
 0xcf8   : > { %p4012_p9 = pneg %p4011_p2 }
 0xcfa   : > { %p4017_p3 = pnand %p4015_p4, %p4012_p9 }
 0xcfc   : > { %4020 = shalt.err (!%p4017_p3)
}
 0xcfd   : > { %s4097_s2 = smov 128   ;;  %s4098_s14 = smov 8  }
 0xcfe   : > { %3492 = dma.vmem_to_hbm [thread:$0]  (%p3521_p5), %s2903_s30, 512, %s5129_s23, [#allocation6], %s4097_s2, %s4097_s2, %s4098_s14  }
 0xcff   : > { %4054 = dma.done.wait (%p3521_p5), [#allocation6], 512  }
 0xd00   : > { %4056 = vsyncadd (%p3521_p5), [#allocation6], 4294966784 }
 0xd01 PF: > { %s5130_s20 = sld [smem:[#allocation23_spill]]  ;;  %s5131_s27 = sld [smem:[#allocation22_spill]] }
 0xd02   : > { %s5132_s19 = sld [smem:[#allocation24_spill]]  ;;  %s5133_s17 = smov %s4063_s18 }
 0xd07   : > { %p30_p10 = scmp.ge.s32.totalorder %s5130_s20, 4   ;;  %s5134_s18 = smov %s5131_s27 }
 0xd09   :  { %32 = sbr.rel (!%p30_p10) target bundleno = 15 (0xf), region = 187 }
 0xd10   :  { %2929 = vsyncpa [#allocation5], 1 }
 0xd11   :  { %2931 = vsyncpa [#allocation5 + $0x1], 1 }
 0xd12   :  { %2932 = vsyncpa [#allocation8], 1 }
 0xd13   :  { %2934 = vsyncpa [#allocation8 + $0x1], 1 }
 0xd14   :  { %2935 = vsyncpa [#allocation11], 1 }
 0xd15   :  { %2937 = vsyncpa [#allocation11 + $0x1], 1 }
 0xd16   :  { %2938 = vsyncpa [#allocation14], 1 }
 0xd17   :  { %2940 = vsyncpa [#allocation14 + $0x1], 1 }
 0xd18   :  { %2941 = vsyncpa [#allocation6], 1 }
 0xd19   :  { %2943 = vsyncpa [#allocation6 + $0x1], 1 }

</bundles_post_ra>
